<compile_context>
chip_gen: v7x
topology: tpu7x:2x2x1
jax: 0.10.0
libtpu: 0.0.40
codegen_flags: <defaults>
</compile_context>

<pallas_src>
import functools
import math

import jax
import jax.numpy as jnp
from jax import lax
from jax.experimental import pallas as pl
from jax.experimental.pallas import tpu as pltpu


def _sigmoid(z):
    return 1.0 / (1.0 + jnp.exp(-z))


def _softplus(z):
    return jnp.maximum(z, 0.0) + jnp.log(1.0 + jnp.exp(-jnp.abs(z)))


# --------------------------------------------------------------------------
# Fused MambaBlock kernel: G lane-packed batch elements per grid step.
# --------------------------------------------------------------------------
def _mamba_fused_kernel(x_ref, w_in_ref, conv_w_ref, conv_b_ref,
                        w_dtc_ref, b_dt_ref, adj_ref, w_bc_ref,
                        a_t_ref, d_ref, w_out_ref,
                        o_ref, y_s,
                        *, seq_len, d_conv, d_inner, d_state, n_pack):
    f32, bf16 = jnp.float32, jnp.bfloat16
    l, G = seq_len, n_pack
    gd = G * d_inner                                   # lane-packed width

    # ---- in_proj (bias=False): (l, G*d_model) @ packed W_in ----------------
    xr = jnp.dot(x_ref[...].astype(bf16), w_in_ref[...],
                 preferred_element_type=f32)           # (l, 2*G*d_inner)
    x_in = xr[:, :gd]                                  # (l, G*d_inner) lane-packed
    res = xr[:, gd:]                                   # (l, G*d_inner)

    # ---- depthwise causal conv1d + SiLU (time on sublanes, chans on lanes) -
    # Each lane is one (batch, channel) pair, so the roll never mixes batches.
    row = lax.broadcasted_iota(jnp.int32, (l, gd), 0)
    acc = x_in * conv_w_ref[d_conv - 1:d_conv, :]      # zero-shift tap
    for k in range(d_conv - 1):                        # d_conv is tiny & static
        shift = d_conv - 1 - k
        xs = pltpu.roll(x_in, shift, 0)                # sublane rotate (XLU slot)
        xs = jnp.where(row >= shift, xs, 0.0)          # causal mask
        acc = acc + xs * conv_w_ref[k:k + 1, :]
    z = acc + conv_b_ref[...]
    xc = z * _sigmoid(z)                               # SiLU, (l, G*d_inner)

    # ---- x_proj (dt_proj folded), adjacency matmul, and B/C ----------------
    xcb = xc.astype(bf16)
    delta = _softplus(
        jnp.dot(xcb, w_dtc_ref[...], preferred_element_type=f32) + b_dt_ref[...])
    delta_p = jnp.dot(delta.astype(bf16), adj_ref[...],
                      preferred_element_type=f32)      # (l, G*d_inner)
    dpu = delta_p * xc                                 # delta_p * u

    # B/C directly in (G*2*d_state, l) orientation (trans-B dot on the idle
    # MXU) so the scan needs no activation transpose.
    dims = (((1,), (1,)), ((), ()))
    bct = lax.dot_general(w_bc_ref[...], xcb, dims,
                          preferred_element_type=f32)  # (G*2n, l)

    a_t = a_t_ref[...]                                 # (d_state, G*d_inner)

    # ---- hoist ALL per-step scan coefficients off the serial chain ---------
    dA, dBu, cB = [], [], []
    for i in range(l):                                 # static, independent per i
        dp_i = delta_p[i:i + 1, :]                     # (1, G*d_inner)
        dpu_i = dpu[i:i + 1, :]
        dA.append(jnp.exp(dp_i * a_t))                 # (n, G*d_inner)
        dbu_p, c_p = [], []
        for g in range(G):
            base = 2 * d_state * g
            b_col = bct[base:base + d_state, i:i + 1]              # (n, 1) static
            c_col = bct[base + d_state:base + 2 * d_state, i:i + 1]
            dbu_p.append(b_col * dpu_i[:, g * d_inner:(g + 1) * d_inner])
            c_p.append(jnp.broadcast_to(c_col, (d_state, d_inner)))
        dBu.append(jnp.concatenate(dbu_p, axis=1))     # (n, G*d_inner)
        cB.append(jnp.concatenate(c_p, axis=1))        # (n, G*d_inner)

    # ---- serial selective scan: per-step body is one fused multiply-add ----
    # TODO(synk): for large seq_len switch to lax.fori_loop with a capped
    # unroll factor (full static unroll here is fine at l=8).
    state = jnp.zeros((d_state, gd), f32)
    for i in range(l):
        state = dA[i] * state + dBu[i]
        y_s[pl.ds(i, 1), :] = jnp.sum(state * cB[i], axis=0, keepdims=True)

    # ---- y = scan + u*D, SiLU(res) gate, out_proj (bias=False) -------------
    y = y_s[...] + xc * d_ref[...]
    gate = res * pl.reciprocal(1.0 + jnp.exp(-res), approx=True)
    yg = y * gate
    o_ref[...] = jnp.dot(yg.astype(bf16), w_out_ref[...],
                         preferred_element_type=f32)   # (l, G*d_model)


def mamba_block_forward(params, x):
    b, l, d_model = x.shape
    d_inner, d_state = params["A_log"].shape
    dt_rank = params["W_dt"].shape[0]
    d_conv = params["conv_w"].shape[0]

    # Lane-pack G batch elements per grid step (2 * d_inner=64 -> 128 lanes).
    G = 2 if (b % 2 == 0) else 1
    nb = b // G
    bf16 = jnp.bfloat16

    # ---- one-time parameter refolding (offline, outside the hot kernel) ----
    w_x = params["W_x"]
    w_dtc = jnp.dot(w_x[:, :dt_rank], params["W_dt"],
                    precision=lax.Precision.HIGHEST)       # dt_proj folded in
    w_bc_t = jnp.transpose(w_x[:, dt_rank:])               # (2*d_state, d_inner)
    a_t = jnp.transpose(-jnp.exp(params["A_log"]))         # (d_state, d_inner)
    w_in = params["W_in"]
    w_xin, w_res = w_in[:, :d_inner], w_in[:, d_inner:]
    w_out = params["W_out"]
    adj = params["adj_padded"]

    # Lane-packed / block-diagonal weights so every matmul keeps the G batch
    # elements separated while staying a single MXU call.
    w_in_pk = jnp.zeros((G * d_model, 2 * G * d_inner), jnp.float32)
    w_dtc_bd = jnp.zeros((G * d_inner, G * d_inner), jnp.float32)
    adj_bd = jnp.zeros((G * d_inner, G * d_inner), jnp.float32)
    w_bc_bd = jnp.zeros((2 * d_state * G, G * d_inner), jnp.float32)
    w_out_bd = jnp.zeros((G * d_inner, G * d_model), jnp.float32)
    for g in range(G):
        rm, ri, ro = g * d_model, g * d_inner, 2 * d_state * g
        w_in_pk = w_in_pk.at[rm:rm + d_model, ri:ri + d_inner].set(w_xin)
        w_in_pk = w_in_pk.at[rm:rm + d_model,
                             G * d_inner + ri:G * d_inner + ri + d_inner].set(w_res)
        w_dtc_bd = w_dtc_bd.at[ri:ri + d_inner, ri:ri + d_inner].set(w_dtc)
        adj_bd = adj_bd.at[ri:ri + d_inner, ri:ri + d_inner].set(adj)
        w_bc_bd = w_bc_bd.at[ro:ro + 2 * d_state, ri:ri + d_inner].set(w_bc_t)
        w_out_bd = w_out_bd.at[ri:ri + d_inner, rm:rm + d_model].set(w_out)

    conv_w_t = jnp.tile(params["conv_w"], (1, G))                     # (k, G*d_inner)
    conv_b_t = jnp.tile(params["conv_b"].reshape(1, d_inner), (1, G))
    b_dt_t = jnp.tile(params["b_dt"].reshape(1, d_inner), (1, G))
    a_t_t = jnp.tile(a_t, (1, G))                                     # (n, G*d_inner)
    d_t = jnp.tile(params["D"].reshape(1, d_inner), (1, G))

    # Lane-pack the input: (b, l, d_model) -> (b//G, l, G*d_model).
    x_pk = (x.reshape(nb, G, l, d_model).transpose(0, 2, 1, 3)
            .reshape(nb, l, G * d_model))

    kernel = functools.partial(_mamba_fused_kernel, seq_len=l, d_conv=d_conv,
                               d_inner=d_inner, d_state=d_state, n_pack=G)

    def _full(shape):
        n = len(shape)
        return pl.BlockSpec(shape, lambda i: (0,) * n)

    out_pk = pl.pallas_call(
        kernel,
        out_shape=jax.ShapeDtypeStruct((nb, l, G * d_model), jnp.float32),
        grid=(nb,),
        in_specs=[
            pl.BlockSpec((None, l, G * d_model), lambda i: (i, 0, 0)),  # x (packed)
            _full((G * d_model, 2 * G * d_inner)),                      # W_in packed (bf16)
            _full((d_conv, G * d_inner)),                               # conv_w tiled
            _full((1, G * d_inner)),                                    # conv_b tiled
            _full((G * d_inner, G * d_inner)),                          # W_dtc blkdiag (bf16)
            _full((1, G * d_inner)),                                    # b_dt tiled
            _full((G * d_inner, G * d_inner)),                          # adj blkdiag (bf16)
            _full((2 * d_state * G, G * d_inner)),                      # W_BC^T blkdiag (bf16)
            _full((d_state, G * d_inner)),                              # A^T tiled
            _full((1, G * d_inner)),                                    # D tiled
            _full((G * d_inner, G * d_model)),                          # W_out blkdiag (bf16)
        ],
        out_specs=pl.BlockSpec((None, l, G * d_model), lambda i: (i, 0, 0)),
        scratch_shapes=[pltpu.VMEM((l, G * d_inner), jnp.float32)],      # y rows
        compiler_params=pltpu.CompilerParams(
            # One TC on v5e/v6e -> serial grid; shards across v7x's 2 TCs
            # whenever b//G >= 2.
            dimension_semantics=("parallel",)),
    )(x_pk, w_in_pk.astype(bf16), conv_w_t, conv_b_t,
      w_dtc_bd.astype(bf16), b_dt_t, adj_bd.astype(bf16),
      w_bc_bd.astype(bf16), a_t_t, d_t, w_out_bd.astype(bf16))

    # Un-pack the lane-packed output: (b//G, l, G*d_model) -> (b, l, d_model).
    out = (out_pk.reshape(nb, l, G, d_model).transpose(0, 2, 1, 3)
           .reshape(b, l, d_model))
    return out


# --------------------------------------------------------------------------
# Pure-JAX reference (mirrors the PyTorch MambaBlock.forward semantics).
# --------------------------------------------------------------------------
def reference_forward(params, x):
    b, l, d_model = x.shape
    d_inner, d_state = params["A_log"].shape
    dt_rank = params["W_dt"].shape[0]
    d_conv = params["conv_w"].shape[0]

    xr = jnp.dot(x.reshape(b * l, d_model), params["W_in"])
    x_in = xr[:, :d_inner].reshape(b, l, d_inner)
    res = xr[:, d_inner:].reshape(b, l, d_inner)

    xp = jnp.pad(x_in, ((0, 0), (d_conv - 1, 0), (0, 0)))
    conv = jnp.zeros_like(x_in)
    for k in range(d_conv):
        conv = conv + xp[:, k:k + l, :] * params["conv_w"][k][None, None, :]
    conv = conv + params["conv_b"][None, None, :]
    xc = conv * _sigmoid(conv)

    x_dbl = jnp.dot(xc.reshape(b * l, d_inner), params["W_x"])
    dt = x_dbl[:, :dt_rank]
    Bm = x_dbl[:, dt_rank:dt_rank + d_state].reshape(b, l, d_state)
    Cm = x_dbl[:, dt_rank + d_state:].reshape(b, l, d_state)
    z = jnp.dot(dt, params["W_dt"]) + params["b_dt"]
    delta = _softplus(z)
    delta_p = jnp.dot(delta, params["adj_padded"]).reshape(b, l, d_inner)

    A = -jnp.exp(params["A_log"])
    deltaA = jnp.exp(jnp.einsum("bld,dn->bldn", delta_p, A))
    deltaB_u = jnp.einsum("bld,bln,bld->bldn", delta_p, Bm, xc)
    xs = jnp.zeros((b, d_inner, d_state), jnp.float32)
    ys = []
    for i in range(l):
        xs = deltaA[:, i] * xs + deltaB_u[:, i]
        ys.append(jnp.einsum("bdn,bn->bd", xs, Cm[:, i]))
    y = jnp.stack(ys, axis=1) + xc * params["D"][None, None, :]

    yg = y * (res * _sigmoid(res))
    out = jnp.dot(yg.reshape(b * l, d_inner), params["W_out"])
    return out.reshape(b, l, d_model)


# --------------------------------------------------------------------------
# Deterministic parameter construction (matches the PyTorch __init__ shapes).
# --------------------------------------------------------------------------
def init_params(key, d_model, d_inner, dt_rank, d_state, d_conv, feature_size):
    keys = jax.random.split(key, 8)

    def unif(k, shape, fan_in):
        bound = 1.0 / math.sqrt(fan_in)
        return jax.random.uniform(k, shape, jnp.float32, -bound, bound)

    params = {}
    # nn.Linear weights stored already transposed (in, out) for right-multiply.
    params["W_in"] = unif(keys[0], (d_model, 2 * d_inner), d_model)       # bias=False
    params["conv_w"] = unif(keys[1], (d_conv, d_inner), d_conv)           # depthwise (k, c)
    params["conv_b"] = unif(keys[2], (d_inner,), d_conv)
    params["W_x"] = unif(keys[3], (d_inner, dt_rank + 2 * d_state), d_inner)
    params["W_dt"] = unif(keys[4], (dt_rank, d_inner), dt_rank)
    params["b_dt"] = unif(keys[5], (d_inner,), dt_rank)
    params["W_out"] = unif(keys[6], (d_inner, d_model), d_inner)          # bias=False
    params["A_log"] = jnp.log(
        jnp.tile(jnp.arange(1, d_state + 1, dtype=jnp.float32)[None, :], (d_inner, 1)))
    params["D"] = jnp.ones((d_inner,), jnp.float32)
    # TODO(synk): DynamicFilterGNN.get_transformed_adjacency() source is not provided;
    # use a deterministic synthetic (feature_size, feature_size) adjacency in its place.
    temp_adj = jax.random.uniform(keys[7], (feature_size, feature_size), jnp.float32)
    adj_padded = jnp.ones((d_inner, d_inner), jnp.float32)
    adj_padded = adj_padded.at[:feature_size, :feature_size].set(temp_adj)
    params["adj_padded"] = adj_padded
    return params


if __name__ == "__main__":
    d_model, expand, d_state, d_conv = 32, 2, 16, 4
    d_inner = expand * d_model                    # 64
    dt_rank = math.ceil(d_model / 16)             # 2
    feature_size = 16                             # DFGNN feature_size (<= d_inner)
    batch, seq_len = 2, 8

    key = jax.random.PRNGKey(0)
    pkey, xkey = jax.random.split(key)
    params = init_params(pkey, d_model, d_inner, dt_rank, d_state, d_conv,
                         feature_size)
    x = jax.random.normal(xkey, (batch, seq_len, d_model), jnp.float32)

    out = jax.block_until_ready(mamba_block_forward(params, x))
    ref = jax.block_until_ready(reference_forward(params, x))
    assert out.shape == (batch, seq_len, d_model)
    # bf16 MXU operands in the kernel (same effective precision as the default
    # MXU path) vs. the f32 XLA reference -> relaxed tolerance.
    if not jnp.allclose(out, ref, rtol=5e-2, atol=5e-2):
        raise AssertionError(
            f"mismatch: max abs diff = {float(jnp.max(jnp.abs(out - ref)))}")
    print("KERNEL_OK")
</pallas_src>

<mosaic_0001>
module attributes {stable_mosaic.version = 11 : i64} {
  func.func @_mamba_fused_kernel(%arg0: i32, %arg1: memref<1x8x64xf32, #tpu.memory_space<vmem>>, %arg2: memref<64x256xbf16, #tpu.memory_space<vmem>>, %arg3: memref<4x128xf32, #tpu.memory_space<vmem>>, %arg4: memref<1x128xf32, #tpu.memory_space<vmem>>, %arg5: memref<128x128xbf16, #tpu.memory_space<vmem>>, %arg6: memref<1x128xf32, #tpu.memory_space<vmem>>, %arg7: memref<128x128xbf16, #tpu.memory_space<vmem>>, %arg8: memref<64x128xbf16, #tpu.memory_space<vmem>>, %arg9: memref<16x128xf32, #tpu.memory_space<vmem>>, %arg10: memref<1x128xf32, #tpu.memory_space<vmem>>, %arg11: memref<128x64xbf16, #tpu.memory_space<vmem>>, %arg12: memref<1x8x64xf32, #tpu.memory_space<vmem>>, %arg13: memref<8x128xf32, #tpu.memory_space<vmem>>) attributes {dimension_semantics = [#tpu.dimension_semantics<parallel>], iteration_bounds = array<i64: 1>, scalar_prefetch = 0 : i64, scratch_operands = 1 : i64, tpu.core_type = #tpu.core_type<tc>, window_params = [{transform_indices = @transform_0, window_bounds = array<i64: 1, 8, 64>}, {pipeline_mode = #tpu.pipeline_mode<synchronous>, transform_indices = @transform_1, window_bounds = array<i64: 64, 256>}, {pipeline_mode = #tpu.pipeline_mode<synchronous>, transform_indices = @transform_2, window_bounds = array<i64: 4, 128>}, {pipeline_mode = #tpu.pipeline_mode<synchronous>, transform_indices = @transform_3, window_bounds = array<i64: 1, 128>}, {pipeline_mode = #tpu.pipeline_mode<synchronous>, transform_indices = @transform_4, window_bounds = array<i64: 128, 128>}, {pipeline_mode = #tpu.pipeline_mode<synchronous>, transform_indices = @transform_5, window_bounds = array<i64: 1, 128>}, {pipeline_mode = #tpu.pipeline_mode<synchronous>, transform_indices = @transform_6, window_bounds = array<i64: 128, 128>}, {pipeline_mode = #tpu.pipeline_mode<synchronous>, transform_indices = @transform_7, window_bounds = array<i64: 64, 128>}, {pipeline_mode = #tpu.pipeline_mode<synchronous>, transform_indices = @transform_8, window_bounds = array<i64: 16, 128>}, {pipeline_mode = #tpu.pipeline_mode<synchronous>, transform_indices = @transform_9, window_bounds = array<i64: 1, 128>}, {pipeline_mode = #tpu.pipeline_mode<synchronous>, transform_indices = @transform_10, window_bounds = array<i64: 128, 64>}, {transform_indices = @transform_11, window_bounds = array<i64: 1, 8, 64>}]} {
    %c0 = arith.constant 0 : index
    %c0_0 = arith.constant 0 : index
    %c0_1 = arith.constant 0 : index
    %0 = vector.load %arg1[%c0, %c0_0, %c0_1] : memref<1x8x64xf32, #tpu.memory_space<vmem>>, vector<1x8x64xf32>
    %1 = vector.shape_cast %0 : vector<1x8x64xf32> to vector<8x64xf32>
    %2 = arith.truncf %1 : vector<8x64xf32> to vector<8x64xbf16>
    %c0_2 = arith.constant 0 : index
    %c0_3 = arith.constant 0 : index
    %3 = vector.load %arg2[%c0_2, %c0_3] : memref<64x256xbf16, #tpu.memory_space<vmem>>, vector<64x256xbf16>
    %cst = arith.constant dense<0.000000e+00> : vector<8x256xf32>
    %4 = tpu.matmul %2, %3, %cst {dimension_numbers = #tpu.dot_dimension_numbers<[1], [0], [0], [1], [0, 0, 1, 1], [], []>} : vector<8x64xbf16>, vector<64x256xbf16>, vector<8x256xf32> -> vector<8x256xf32>
    %5 = vector.extract_strided_slice %4 {offsets = [0, 0], sizes = [8, 128], strides = [1, 1]} : vector<8x256xf32> to vector<8x128xf32>
    %6 = vector.extract_strided_slice %4 {offsets = [0, 128], sizes = [8, 128], strides = [1, 1]} : vector<8x256xf32> to vector<8x128xf32>
    %7 = tpu.iota {dimensions = array<i32: 0>} : vector<8x128xi32>
    %c3 = arith.constant 3 : index
    %c0_4 = arith.constant 0 : index
    %8 = vector.load %arg3[%c3, %c0_4] : memref<4x128xf32, #tpu.memory_space<vmem>>, vector<1x128xf32>
    %9 = vector.broadcast %8 : vector<1x128xf32> to vector<8x128xf32>
    %10 = arith.mulf %5, %9 : vector<8x128xf32>
    %c3_i32 = arith.constant 3 : i32
    %11 = tpu.dynamic_rotate %5 by %c3_i32 dim 0 : vector<8x128xf32>, i32 -> vector<8x128xf32>
    %c3_i32_5 = arith.constant 3 : i32
    %12 = vector.broadcast %c3_i32_5 : i32 to vector<8x128xi32>
    %13 = arith.cmpi sge, %7, %12 : vector<8x128xi32>
    %cst_6 = arith.constant 0.000000e+00 : f32
    %14 = vector.broadcast %cst_6 : f32 to vector<8x128xf32>
    %15 = arith.select %13, %11, %14 : vector<8x128xi1>, vector<8x128xf32>
    %c0_7 = arith.constant 0 : index
    %c0_8 = arith.constant 0 : index
    %16 = vector.load %arg3[%c0_7, %c0_8] : memref<4x128xf32, #tpu.memory_space<vmem>>, vector<1x128xf32>
    %17 = vector.broadcast %16 : vector<1x128xf32> to vector<8x128xf32>
    %18 = arith.mulf %15, %17 : vector<8x128xf32>
    %19 = arith.addf %10, %18 : vector<8x128xf32>
    %c2_i32 = arith.constant 2 : i32
    %20 = tpu.dynamic_rotate %5 by %c2_i32 dim 0 : vector<8x128xf32>, i32 -> vector<8x128xf32>
    %c2_i32_9 = arith.constant 2 : i32
    %21 = vector.broadcast %c2_i32_9 : i32 to vector<8x128xi32>
    %22 = arith.cmpi sge, %7, %21 : vector<8x128xi32>
    %cst_10 = arith.constant 0.000000e+00 : f32
    %23 = vector.broadcast %cst_10 : f32 to vector<8x128xf32>
    %24 = arith.select %22, %20, %23 : vector<8x128xi1>, vector<8x128xf32>
    %c1 = arith.constant 1 : index
    %c0_11 = arith.constant 0 : index
    %25 = vector.load %arg3[%c1, %c0_11] : memref<4x128xf32, #tpu.memory_space<vmem>>, vector<1x128xf32>
    %26 = vector.broadcast %25 : vector<1x128xf32> to vector<8x128xf32>
    %27 = arith.mulf %24, %26 : vector<8x128xf32>
    %28 = arith.addf %19, %27 : vector<8x128xf32>
    %c1_i32 = arith.constant 1 : i32
    %29 = tpu.dynamic_rotate %5 by %c1_i32 dim 0 : vector<8x128xf32>, i32 -> vector<8x128xf32>
    %c1_i32_12 = arith.constant 1 : i32
    %30 = vector.broadcast %c1_i32_12 : i32 to vector<8x128xi32>
    %31 = arith.cmpi sge, %7, %30 : vector<8x128xi32>
    %cst_13 = arith.constant 0.000000e+00 : f32
    %32 = vector.broadcast %cst_13 : f32 to vector<8x128xf32>
    %33 = arith.select %31, %29, %32 : vector<8x128xi1>, vector<8x128xf32>
    %c2 = arith.constant 2 : index
    %c0_14 = arith.constant 0 : index
    %34 = vector.load %arg3[%c2, %c0_14] : memref<4x128xf32, #tpu.memory_space<vmem>>, vector<1x128xf32>
    %35 = vector.broadcast %34 : vector<1x128xf32> to vector<8x128xf32>
    %36 = arith.mulf %33, %35 : vector<8x128xf32>
    %37 = arith.addf %28, %36 : vector<8x128xf32>
    %c0_15 = arith.constant 0 : index
    %c0_16 = arith.constant 0 : index
    %38 = vector.load %arg4[%c0_15, %c0_16] : memref<1x128xf32, #tpu.memory_space<vmem>>, vector<1x128xf32>
    %39 = vector.broadcast %38 : vector<1x128xf32> to vector<8x128xf32>
    %40 = arith.addf %37, %39 : vector<8x128xf32>
    %cst_17 = arith.constant 0.000000e+00 : f32
    %41 = vector.broadcast %cst_17 : f32 to vector<8x128xf32>
    %42 = arith.subf %41, %40 : vector<8x128xf32>
    %43 = math.exp %42 : vector<8x128xf32>
    %cst_18 = arith.constant 1.000000e+00 : f32
    %44 = vector.broadcast %cst_18 : f32 to vector<8x128xf32>
    %45 = arith.addf %44, %43 : vector<8x128xf32>
    %cst_19 = arith.constant 1.000000e+00 : f32
    %46 = vector.broadcast %cst_19 : f32 to vector<8x128xf32>
    %47 = arith.divf %46, %45 : vector<8x128xf32>
    %48 = arith.mulf %40, %47 : vector<8x128xf32>
    %49 = arith.truncf %48 : vector<8x128xf32> to vector<8x128xbf16>
    %c0_20 = arith.constant 0 : index
    %c0_21 = arith.constant 0 : index
    %50 = vector.load %arg5[%c0_20, %c0_21] : memref<128x128xbf16, #tpu.memory_space<vmem>>, vector<128x128xbf16>
    %cst_22 = arith.constant dense<0.000000e+00> : vector<8x128xf32>
    %51 = tpu.matmul %49, %50, %cst_22 {dimension_numbers = #tpu.dot_dimension_numbers<[1], [0], [0], [1], [0, 0, 1, 1], [], []>} : vector<8x128xbf16>, vector<128x128xbf16>, vector<8x128xf32> -> vector<8x128xf32>
    %c0_23 = arith.constant 0 : index
    %c0_24 = arith.constant 0 : index
    %52 = vector.load %arg6[%c0_23, %c0_24] : memref<1x128xf32, #tpu.memory_space<vmem>>, vector<1x128xf32>
    %53 = vector.broadcast %52 : vector<1x128xf32> to vector<8x128xf32>
    %54 = arith.addf %51, %53 : vector<8x128xf32>
    %cst_25 = arith.constant 0.000000e+00 : f32
    %55 = vector.broadcast %cst_25 : f32 to vector<8x128xf32>
    %56 = arith.maximumf %54, %55 : vector<8x128xf32>
    %57 = math.absf %54 : vector<8x128xf32>
    %cst_26 = arith.constant 0.000000e+00 : f32
    %58 = vector.broadcast %cst_26 : f32 to vector<8x128xf32>
    %59 = arith.subf %58, %57 : vector<8x128xf32>
    %60 = math.exp %59 : vector<8x128xf32>
    %cst_27 = arith.constant 1.000000e+00 : f32
    %61 = vector.broadcast %cst_27 : f32 to vector<8x128xf32>
    %62 = arith.addf %61, %60 : vector<8x128xf32>
    %63 = math.log %62 : vector<8x128xf32>
    %64 = arith.addf %56, %63 : vector<8x128xf32>
    %65 = arith.truncf %64 : vector<8x128xf32> to vector<8x128xbf16>
    %c0_28 = arith.constant 0 : index
    %c0_29 = arith.constant 0 : index
    %66 = vector.load %arg7[%c0_28, %c0_29] : memref<128x128xbf16, #tpu.memory_space<vmem>>, vector<128x128xbf16>
    %cst_30 = arith.constant dense<0.000000e+00> : vector<8x128xf32>
    %67 = tpu.matmul %65, %66, %cst_30 {dimension_numbers = #tpu.dot_dimension_numbers<[1], [0], [0], [1], [0, 0, 1, 1], [], []>} : vector<8x128xbf16>, vector<128x128xbf16>, vector<8x128xf32> -> vector<8x128xf32>
    %68 = arith.mulf %67, %48 : vector<8x128xf32>
    %c0_31 = arith.constant 0 : index
    %c0_32 = arith.constant 0 : index
    %69 = vector.load %arg8[%c0_31, %c0_32] : memref<64x128xbf16, #tpu.memory_space<vmem>>, vector<64x128xbf16>
    %cst_33 = arith.constant dense<0.000000e+00> : vector<64x8xf32>
    %70 = tpu.matmul %69, %49, %cst_33 {dimension_numbers = #tpu.dot_dimension_numbers<[1], [1], [0], [0], [0, 0, 1, 0], [], []>} : vector<64x128xbf16>, vector<8x128xbf16>, vector<64x8xf32> -> vector<64x8xf32>
    %c0_34 = arith.constant 0 : index
    %c0_35 = arith.constant 0 : index
    %71 = vector.load %arg9[%c0_34, %c0_35] : memref<16x128xf32, #tpu.memory_space<vmem>>, vector<16x128xf32>
    %72 = vector.extract_strided_slice %67 {offsets = [0, 0], sizes = [1, 128], strides = [1, 1]} : vector<8x128xf32> to vector<1x128xf32>
    %73 = vector.extract_strided_slice %68 {offsets = [0, 0], sizes = [1, 128], strides = [1, 1]} : vector<8x128xf32> to vector<1x128xf32>
    %74 = vector.broadcast %72 : vector<1x128xf32> to vector<16x128xf32>
    %75 = arith.mulf %74, %71 : vector<16x128xf32>
    %76 = math.exp %75 : vector<16x128xf32>
    %77 = vector.extract_strided_slice %70 {offsets = [0, 0], sizes = [16, 1], strides = [1, 1]} : vector<64x8xf32> to vector<16x1xf32>
    %78 = vector.extract_strided_slice %70 {offsets = [16, 0], sizes = [16, 1], strides = [1, 1]} : vector<64x8xf32> to vector<16x1xf32>
    %79 = vector.extract_strided_slice %73 {offsets = [0, 0], sizes = [1, 64], strides = [1, 1]} : vector<1x128xf32> to vector<1x64xf32>
    %80 = vector.broadcast %77 : vector<16x1xf32> to vector<16x64xf32>
    %81 = vector.broadcast %79 : vector<1x64xf32> to vector<16x64xf32>
    %82 = arith.mulf %80, %81 : vector<16x64xf32>
    %83 = vector.shape_cast %78 : vector<16x1xf32> to vector<16x1xf32>
    %84 = vector.broadcast %83 : vector<16x1xf32> to vector<16x64xf32>
    %85 = vector.extract_strided_slice %70 {offsets = [32, 0], sizes = [16, 1], strides = [1, 1]} : vector<64x8xf32> to vector<16x1xf32>
    %86 = vector.extract_strided_slice %70 {offsets = [48, 0], sizes = [16, 1], strides = [1, 1]} : vector<64x8xf32> to vector<16x1xf32>
    %87 = vector.extract_strided_slice %73 {offsets = [0, 64], sizes = [1, 64], strides = [1, 1]} : vector<1x128xf32> to vector<1x64xf32>
    %88 = vector.broadcast %85 : vector<16x1xf32> to vector<16x64xf32>
    %89 = vector.broadcast %87 : vector<1x64xf32> to vector<16x64xf32>
    %90 = arith.mulf %88, %89 : vector<16x64xf32>
    %91 = vector.shape_cast %86 : vector<16x1xf32> to vector<16x1xf32>
    %92 = vector.broadcast %91 : vector<16x1xf32> to vector<16x64xf32>
    %93 = tpu.concatenate %82, %90 in 1 : vector<16x64xf32>, vector<16x64xf32> -> vector<16x128xf32>
    %94 = tpu.concatenate %84, %92 in 1 : vector<16x64xf32>, vector<16x64xf32> -> vector<16x128xf32>
    %95 = vector.extract_strided_slice %67 {offsets = [1, 0], sizes = [1, 128], strides = [1, 1]} : vector<8x128xf32> to vector<1x128xf32>
    %96 = vector.extract_strided_slice %68 {offsets = [1, 0], sizes = [1, 128], strides = [1, 1]} : vector<8x128xf32> to vector<1x128xf32>
    %97 = vector.broadcast %95 : vector<1x128xf32> to vector<16x128xf32>
    %98 = arith.mulf %97, %71 : vector<16x128xf32>
    %99 = math.exp %98 : vector<16x128xf32>
    %100 = vector.extract_strided_slice %70 {offsets = [0, 1], sizes = [16, 1], strides = [1, 1]} : vector<64x8xf32> to vector<16x1xf32>
    %101 = vector.extract_strided_slice %70 {offsets = [16, 1], sizes = [16, 1], strides = [1, 1]} : vector<64x8xf32> to vector<16x1xf32>
    %102 = vector.extract_strided_slice %96 {offsets = [0, 0], sizes = [1, 64], strides = [1, 1]} : vector<1x128xf32> to vector<1x64xf32>
    %103 = vector.broadcast %100 : vector<16x1xf32> to vector<16x64xf32>
    %104 = vector.broadcast %102 : vector<1x64xf32> to vector<16x64xf32>
    %105 = arith.mulf %103, %104 : vector<16x64xf32>
    %106 = vector.shape_cast %101 : vector<16x1xf32> to vector<16x1xf32>
    %107 = vector.broadcast %106 : vector<16x1xf32> to vector<16x64xf32>
    %108 = vector.extract_strided_slice %70 {offsets = [32, 1], sizes = [16, 1], strides = [1, 1]} : vector<64x8xf32> to vector<16x1xf32>
    %109 = vector.extract_strided_slice %70 {offsets = [48, 1], sizes = [16, 1], strides = [1, 1]} : vector<64x8xf32> to vector<16x1xf32>
    %110 = vector.extract_strided_slice %96 {offsets = [0, 64], sizes = [1, 64], strides = [1, 1]} : vector<1x128xf32> to vector<1x64xf32>
    %111 = vector.broadcast %108 : vector<16x1xf32> to vector<16x64xf32>
    %112 = vector.broadcast %110 : vector<1x64xf32> to vector<16x64xf32>
    %113 = arith.mulf %111, %112 : vector<16x64xf32>
    %114 = vector.shape_cast %109 : vector<16x1xf32> to vector<16x1xf32>
    %115 = vector.broadcast %114 : vector<16x1xf32> to vector<16x64xf32>
    %116 = tpu.concatenate %105, %113 in 1 : vector<16x64xf32>, vector<16x64xf32> -> vector<16x128xf32>
    %117 = tpu.concatenate %107, %115 in 1 : vector<16x64xf32>, vector<16x64xf32> -> vector<16x128xf32>
    %118 = vector.extract_strided_slice %67 {offsets = [2, 0], sizes = [1, 128], strides = [1, 1]} : vector<8x128xf32> to vector<1x128xf32>
    %119 = vector.extract_strided_slice %68 {offsets = [2, 0], sizes = [1, 128], strides = [1, 1]} : vector<8x128xf32> to vector<1x128xf32>
    %120 = vector.broadcast %118 : vector<1x128xf32> to vector<16x128xf32>
    %121 = arith.mulf %120, %71 : vector<16x128xf32>
    %122 = math.exp %121 : vector<16x128xf32>
    %123 = vector.extract_strided_slice %70 {offsets = [0, 2], sizes = [16, 1], strides = [1, 1]} : vector<64x8xf32> to vector<16x1xf32>
    %124 = vector.extract_strided_slice %70 {offsets = [16, 2], sizes = [16, 1], strides = [1, 1]} : vector<64x8xf32> to vector<16x1xf32>
    %125 = vector.extract_strided_slice %119 {offsets = [0, 0], sizes = [1, 64], strides = [1, 1]} : vector<1x128xf32> to vector<1x64xf32>
    %126 = vector.broadcast %123 : vector<16x1xf32> to vector<16x64xf32>
    %127 = vector.broadcast %125 : vector<1x64xf32> to vector<16x64xf32>
    %128 = arith.mulf %126, %127 : vector<16x64xf32>
    %129 = vector.shape_cast %124 : vector<16x1xf32> to vector<16x1xf32>
    %130 = vector.broadcast %129 : vector<16x1xf32> to vector<16x64xf32>
    %131 = vector.extract_strided_slice %70 {offsets = [32, 2], sizes = [16, 1], strides = [1, 1]} : vector<64x8xf32> to vector<16x1xf32>
    %132 = vector.extract_strided_slice %70 {offsets = [48, 2], sizes = [16, 1], strides = [1, 1]} : vector<64x8xf32> to vector<16x1xf32>
    %133 = vector.extract_strided_slice %119 {offsets = [0, 64], sizes = [1, 64], strides = [1, 1]} : vector<1x128xf32> to vector<1x64xf32>
    %134 = vector.broadcast %131 : vector<16x1xf32> to vector<16x64xf32>
    %135 = vector.broadcast %133 : vector<1x64xf32> to vector<16x64xf32>
    %136 = arith.mulf %134, %135 : vector<16x64xf32>
    %137 = vector.shape_cast %132 : vector<16x1xf32> to vector<16x1xf32>
    %138 = vector.broadcast %137 : vector<16x1xf32> to vector<16x64xf32>
    %139 = tpu.concatenate %128, %136 in 1 : vector<16x64xf32>, vector<16x64xf32> -> vector<16x128xf32>
    %140 = tpu.concatenate %130, %138 in 1 : vector<16x64xf32>, vector<16x64xf32> -> vector<16x128xf32>
    %141 = vector.extract_strided_slice %67 {offsets = [3, 0], sizes = [1, 128], strides = [1, 1]} : vector<8x128xf32> to vector<1x128xf32>
    %142 = vector.extract_strided_slice %68 {offsets = [3, 0], sizes = [1, 128], strides = [1, 1]} : vector<8x128xf32> to vector<1x128xf32>
    %143 = vector.broadcast %141 : vector<1x128xf32> to vector<16x128xf32>
    %144 = arith.mulf %143, %71 : vector<16x128xf32>
    %145 = math.exp %144 : vector<16x128xf32>
    %146 = vector.extract_strided_slice %70 {offsets = [0, 3], sizes = [16, 1], strides = [1, 1]} : vector<64x8xf32> to vector<16x1xf32>
    %147 = vector.extract_strided_slice %70 {offsets = [16, 3], sizes = [16, 1], strides = [1, 1]} : vector<64x8xf32> to vector<16x1xf32>
    %148 = vector.extract_strided_slice %142 {offsets = [0, 0], sizes = [1, 64], strides = [1, 1]} : vector<1x128xf32> to vector<1x64xf32>
    %149 = vector.broadcast %146 : vector<16x1xf32> to vector<16x64xf32>
    %150 = vector.broadcast %148 : vector<1x64xf32> to vector<16x64xf32>
    %151 = arith.mulf %149, %150 : vector<16x64xf32>
    %152 = vector.shape_cast %147 : vector<16x1xf32> to vector<16x1xf32>
    %153 = vector.broadcast %152 : vector<16x1xf32> to vector<16x64xf32>
    %154 = vector.extract_strided_slice %70 {offsets = [32, 3], sizes = [16, 1], strides = [1, 1]} : vector<64x8xf32> to vector<16x1xf32>
    %155 = vector.extract_strided_slice %70 {offsets = [48, 3], sizes = [16, 1], strides = [1, 1]} : vector<64x8xf32> to vector<16x1xf32>
    %156 = vector.extract_strided_slice %142 {offsets = [0, 64], sizes = [1, 64], strides = [1, 1]} : vector<1x128xf32> to vector<1x64xf32>
    %157 = vector.broadcast %154 : vector<16x1xf32> to vector<16x64xf32>
    %158 = vector.broadcast %156 : vector<1x64xf32> to vector<16x64xf32>
    %159 = arith.mulf %157, %158 : vector<16x64xf32>
    %160 = vector.shape_cast %155 : vector<16x1xf32> to vector<16x1xf32>
    %161 = vector.broadcast %160 : vector<16x1xf32> to vector<16x64xf32>
    %162 = tpu.concatenate %151, %159 in 1 : vector<16x64xf32>, vector<16x64xf32> -> vector<16x128xf32>
    %163 = tpu.concatenate %153, %161 in 1 : vector<16x64xf32>, vector<16x64xf32> -> vector<16x128xf32>
    %164 = vector.extract_strided_slice %67 {offsets = [4, 0], sizes = [1, 128], strides = [1, 1]} : vector<8x128xf32> to vector<1x128xf32>
    %165 = vector.extract_strided_slice %68 {offsets = [4, 0], sizes = [1, 128], strides = [1, 1]} : vector<8x128xf32> to vector<1x128xf32>
    %166 = vector.broadcast %164 : vector<1x128xf32> to vector<16x128xf32>
    %167 = arith.mulf %166, %71 : vector<16x128xf32>
    %168 = math.exp %167 : vector<16x128xf32>
    %169 = vector.extract_strided_slice %70 {offsets = [0, 4], sizes = [16, 1], strides = [1, 1]} : vector<64x8xf32> to vector<16x1xf32>
    %170 = vector.extract_strided_slice %70 {offsets = [16, 4], sizes = [16, 1], strides = [1, 1]} : vector<64x8xf32> to vector<16x1xf32>
    %171 = vector.extract_strided_slice %165 {offsets = [0, 0], sizes = [1, 64], strides = [1, 1]} : vector<1x128xf32> to vector<1x64xf32>
    %172 = vector.broadcast %169 : vector<16x1xf32> to vector<16x64xf32>
    %173 = vector.broadcast %171 : vector<1x64xf32> to vector<16x64xf32>
    %174 = arith.mulf %172, %173 : vector<16x64xf32>
    %175 = vector.shape_cast %170 : vector<16x1xf32> to vector<16x1xf32>
    %176 = vector.broadcast %175 : vector<16x1xf32> to vector<16x64xf32>
    %177 = vector.extract_strided_slice %70 {offsets = [32, 4], sizes = [16, 1], strides = [1, 1]} : vector<64x8xf32> to vector<16x1xf32>
    %178 = vector.extract_strided_slice %70 {offsets = [48, 4], sizes = [16, 1], strides = [1, 1]} : vector<64x8xf32> to vector<16x1xf32>
    %179 = vector.extract_strided_slice %165 {offsets = [0, 64], sizes = [1, 64], strides = [1, 1]} : vector<1x128xf32> to vector<1x64xf32>
    %180 = vector.broadcast %177 : vector<16x1xf32> to vector<16x64xf32>
    %181 = vector.broadcast %179 : vector<1x64xf32> to vector<16x64xf32>
    %182 = arith.mulf %180, %181 : vector<16x64xf32>
    %183 = vector.shape_cast %178 : vector<16x1xf32> to vector<16x1xf32>
    %184 = vector.broadcast %183 : vector<16x1xf32> to vector<16x64xf32>
    %185 = tpu.concatenate %174, %182 in 1 : vector<16x64xf32>, vector<16x64xf32> -> vector<16x128xf32>
    %186 = tpu.concatenate %176, %184 in 1 : vector<16x64xf32>, vector<16x64xf32> -> vector<16x128xf32>
    %187 = vector.extract_strided_slice %67 {offsets = [5, 0], sizes = [1, 128], strides = [1, 1]} : vector<8x128xf32> to vector<1x128xf32>
    %188 = vector.extract_strided_slice %68 {offsets = [5, 0], sizes = [1, 128], strides = [1, 1]} : vector<8x128xf32> to vector<1x128xf32>
    %189 = vector.broadcast %187 : vector<1x128xf32> to vector<16x128xf32>
    %190 = arith.mulf %189, %71 : vector<16x128xf32>
    %191 = math.exp %190 : vector<16x128xf32>
    %192 = vector.extract_strided_slice %70 {offsets = [0, 5], sizes = [16, 1], strides = [1, 1]} : vector<64x8xf32> to vector<16x1xf32>
    %193 = vector.extract_strided_slice %70 {offsets = [16, 5], sizes = [16, 1], strides = [1, 1]} : vector<64x8xf32> to vector<16x1xf32>
    %194 = vector.extract_strided_slice %188 {offsets = [0, 0], sizes = [1, 64], strides = [1, 1]} : vector<1x128xf32> to vector<1x64xf32>
    %195 = vector.broadcast %192 : vector<16x1xf32> to vector<16x64xf32>
    %196 = vector.broadcast %194 : vector<1x64xf32> to vector<16x64xf32>
    %197 = arith.mulf %195, %196 : vector<16x64xf32>
    %198 = vector.shape_cast %193 : vector<16x1xf32> to vector<16x1xf32>
    %199 = vector.broadcast %198 : vector<16x1xf32> to vector<16x64xf32>
    %200 = vector.extract_strided_slice %70 {offsets = [32, 5], sizes = [16, 1], strides = [1, 1]} : vector<64x8xf32> to vector<16x1xf32>
    %201 = vector.extract_strided_slice %70 {offsets = [48, 5], sizes = [16, 1], strides = [1, 1]} : vector<64x8xf32> to vector<16x1xf32>
    %202 = vector.extract_strided_slice %188 {offsets = [0, 64], sizes = [1, 64], strides = [1, 1]} : vector<1x128xf32> to vector<1x64xf32>
    %203 = vector.broadcast %200 : vector<16x1xf32> to vector<16x64xf32>
    %204 = vector.broadcast %202 : vector<1x64xf32> to vector<16x64xf32>
    %205 = arith.mulf %203, %204 : vector<16x64xf32>
    %206 = vector.shape_cast %201 : vector<16x1xf32> to vector<16x1xf32>
    %207 = vector.broadcast %206 : vector<16x1xf32> to vector<16x64xf32>
    %208 = tpu.concatenate %197, %205 in 1 : vector<16x64xf32>, vector<16x64xf32> -> vector<16x128xf32>
    %209 = tpu.concatenate %199, %207 in 1 : vector<16x64xf32>, vector<16x64xf32> -> vector<16x128xf32>
    %210 = vector.extract_strided_slice %67 {offsets = [6, 0], sizes = [1, 128], strides = [1, 1]} : vector<8x128xf32> to vector<1x128xf32>
    %211 = vector.extract_strided_slice %68 {offsets = [6, 0], sizes = [1, 128], strides = [1, 1]} : vector<8x128xf32> to vector<1x128xf32>
    %212 = vector.broadcast %210 : vector<1x128xf32> to vector<16x128xf32>
    %213 = arith.mulf %212, %71 : vector<16x128xf32>
    %214 = math.exp %213 : vector<16x128xf32>
    %215 = vector.extract_strided_slice %70 {offsets = [0, 6], sizes = [16, 1], strides = [1, 1]} : vector<64x8xf32> to vector<16x1xf32>
    %216 = vector.extract_strided_slice %70 {offsets = [16, 6], sizes = [16, 1], strides = [1, 1]} : vector<64x8xf32> to vector<16x1xf32>
    %217 = vector.extract_strided_slice %211 {offsets = [0, 0], sizes = [1, 64], strides = [1, 1]} : vector<1x128xf32> to vector<1x64xf32>
    %218 = vector.broadcast %215 : vector<16x1xf32> to vector<16x64xf32>
    %219 = vector.broadcast %217 : vector<1x64xf32> to vector<16x64xf32>
    %220 = arith.mulf %218, %219 : vector<16x64xf32>
    %221 = vector.shape_cast %216 : vector<16x1xf32> to vector<16x1xf32>
    %222 = vector.broadcast %221 : vector<16x1xf32> to vector<16x64xf32>
    %223 = vector.extract_strided_slice %70 {offsets = [32, 6], sizes = [16, 1], strides = [1, 1]} : vector<64x8xf32> to vector<16x1xf32>
    %224 = vector.extract_strided_slice %70 {offsets = [48, 6], sizes = [16, 1], strides = [1, 1]} : vector<64x8xf32> to vector<16x1xf32>
    %225 = vector.extract_strided_slice %211 {offsets = [0, 64], sizes = [1, 64], strides = [1, 1]} : vector<1x128xf32> to vector<1x64xf32>
    %226 = vector.broadcast %223 : vector<16x1xf32> to vector<16x64xf32>
    %227 = vector.broadcast %225 : vector<1x64xf32> to vector<16x64xf32>
    %228 = arith.mulf %226, %227 : vector<16x64xf32>
    %229 = vector.shape_cast %224 : vector<16x1xf32> to vector<16x1xf32>
    %230 = vector.broadcast %229 : vector<16x1xf32> to vector<16x64xf32>
    %231 = tpu.concatenate %220, %228 in 1 : vector<16x64xf32>, vector<16x64xf32> -> vector<16x128xf32>
    %232 = tpu.concatenate %222, %230 in 1 : vector<16x64xf32>, vector<16x64xf32> -> vector<16x128xf32>
    %233 = vector.extract_strided_slice %67 {offsets = [7, 0], sizes = [1, 128], strides = [1, 1]} : vector<8x128xf32> to vector<1x128xf32>
    %234 = vector.extract_strided_slice %68 {offsets = [7, 0], sizes = [1, 128], strides = [1, 1]} : vector<8x128xf32> to vector<1x128xf32>
    %235 = vector.broadcast %233 : vector<1x128xf32> to vector<16x128xf32>
    %236 = arith.mulf %235, %71 : vector<16x128xf32>
    %237 = math.exp %236 : vector<16x128xf32>
    %238 = vector.extract_strided_slice %70 {offsets = [0, 7], sizes = [16, 1], strides = [1, 1]} : vector<64x8xf32> to vector<16x1xf32>
    %239 = vector.extract_strided_slice %70 {offsets = [16, 7], sizes = [16, 1], strides = [1, 1]} : vector<64x8xf32> to vector<16x1xf32>
    %240 = vector.extract_strided_slice %234 {offsets = [0, 0], sizes = [1, 64], strides = [1, 1]} : vector<1x128xf32> to vector<1x64xf32>
    %241 = vector.broadcast %238 : vector<16x1xf32> to vector<16x64xf32>
    %242 = vector.broadcast %240 : vector<1x64xf32> to vector<16x64xf32>
    %243 = arith.mulf %241, %242 : vector<16x64xf32>
    %244 = vector.shape_cast %239 : vector<16x1xf32> to vector<16x1xf32>
    %245 = vector.broadcast %244 : vector<16x1xf32> to vector<16x64xf32>
    %246 = vector.extract_strided_slice %70 {offsets = [32, 7], sizes = [16, 1], strides = [1, 1]} : vector<64x8xf32> to vector<16x1xf32>
    %247 = vector.extract_strided_slice %70 {offsets = [48, 7], sizes = [16, 1], strides = [1, 1]} : vector<64x8xf32> to vector<16x1xf32>
    %248 = vector.extract_strided_slice %234 {offsets = [0, 64], sizes = [1, 64], strides = [1, 1]} : vector<1x128xf32> to vector<1x64xf32>
    %249 = vector.broadcast %246 : vector<16x1xf32> to vector<16x64xf32>
    %250 = vector.broadcast %248 : vector<1x64xf32> to vector<16x64xf32>
    %251 = arith.mulf %249, %250 : vector<16x64xf32>
    %252 = vector.shape_cast %247 : vector<16x1xf32> to vector<16x1xf32>
    %253 = vector.broadcast %252 : vector<16x1xf32> to vector<16x64xf32>
    %254 = tpu.concatenate %243, %251 in 1 : vector<16x64xf32>, vector<16x64xf32> -> vector<16x128xf32>
    %255 = tpu.concatenate %245, %253 in 1 : vector<16x64xf32>, vector<16x64xf32> -> vector<16x128xf32>
    %cst_36 = arith.constant 0.000000e+00 : f32
    %256 = vector.broadcast %cst_36 : f32 to vector<16x128xf32>
    %257 = arith.mulf %76, %256 : vector<16x128xf32>
    %258 = arith.addf %257, %93 : vector<16x128xf32>
    %259 = arith.mulf %258, %94 : vector<16x128xf32>
    %cst_37 = arith.constant dense<0.000000e+00> : vector<128xf32>
    %260 = vector.multi_reduction <add>, %259, %cst_37 [0] : vector<16x128xf32> to vector<128xf32>
    %261 = vector.shape_cast %260 : vector<128xf32> to vector<1x128xf32>
    %c0_38 = arith.constant 0 : index
    %c0_39 = arith.constant 0 : index
    %262 = vector.load %arg13[%c0_38, %c0_39] : memref<8x128xf32, #tpu.memory_space<vmem>>, vector<1x128xf32>
    tpu.vector_store %arg13[%c0_38, %c0_39], %261 {strides = array<i32>} : memref<8x128xf32, #tpu.memory_space<vmem>>, vector<1x128xf32>,
    %263 = arith.mulf %99, %258 : vector<16x128xf32>
    %264 = arith.addf %263, %116 : vector<16x128xf32>
    %265 = arith.mulf %264, %117 : vector<16x128xf32>
    %cst_40 = arith.constant dense<0.000000e+00> : vector<128xf32>
    %266 = vector.multi_reduction <add>, %265, %cst_40 [0] : vector<16x128xf32> to vector<128xf32>
    %267 = vector.shape_cast %266 : vector<128xf32> to vector<1x128xf32>
    %c1_41 = arith.constant 1 : index
    %c0_42 = arith.constant 0 : index
    %268 = vector.load %arg13[%c1_41, %c0_42] : memref<8x128xf32, #tpu.memory_space<vmem>>, vector<1x128xf32>
    tpu.vector_store %arg13[%c1_41, %c0_42], %267 {strides = array<i32>} : memref<8x128xf32, #tpu.memory_space<vmem>>, vector<1x128xf32>,
    %269 = arith.mulf %122, %264 : vector<16x128xf32>
    %270 = arith.addf %269, %139 : vector<16x128xf32>
    %271 = arith.mulf %270, %140 : vector<16x128xf32>
    %cst_43 = arith.constant dense<0.000000e+00> : vector<128xf32>
    %272 = vector.multi_reduction <add>, %271, %cst_43 [0] : vector<16x128xf32> to vector<128xf32>
    %273 = vector.shape_cast %272 : vector<128xf32> to vector<1x128xf32>
    %c2_44 = arith.constant 2 : index
    %c0_45 = arith.constant 0 : index
    %274 = vector.load %arg13[%c2_44, %c0_45] : memref<8x128xf32, #tpu.memory_space<vmem>>, vector<1x128xf32>
    tpu.vector_store %arg13[%c2_44, %c0_45], %273 {strides = array<i32>} : memref<8x128xf32, #tpu.memory_space<vmem>>, vector<1x128xf32>,
    %275 = arith.mulf %145, %270 : vector<16x128xf32>
    %276 = arith.addf %275, %162 : vector<16x128xf32>
    %277 = arith.mulf %276, %163 : vector<16x128xf32>
    %cst_46 = arith.constant dense<0.000000e+00> : vector<128xf32>
    %278 = vector.multi_reduction <add>, %277, %cst_46 [0] : vector<16x128xf32> to vector<128xf32>
    %279 = vector.shape_cast %278 : vector<128xf32> to vector<1x128xf32>
    %c3_47 = arith.constant 3 : index
    %c0_48 = arith.constant 0 : index
    %280 = vector.load %arg13[%c3_47, %c0_48] : memref<8x128xf32, #tpu.memory_space<vmem>>, vector<1x128xf32>
    tpu.vector_store %arg13[%c3_47, %c0_48], %279 {strides = array<i32>} : memref<8x128xf32, #tpu.memory_space<vmem>>, vector<1x128xf32>,
    %281 = arith.mulf %168, %276 : vector<16x128xf32>
    %282 = arith.addf %281, %185 : vector<16x128xf32>
    %283 = arith.mulf %282, %186 : vector<16x128xf32>
    %cst_49 = arith.constant dense<0.000000e+00> : vector<128xf32>
    %284 = vector.multi_reduction <add>, %283, %cst_49 [0] : vector<16x128xf32> to vector<128xf32>
    %285 = vector.shape_cast %284 : vector<128xf32> to vector<1x128xf32>
    %c4 = arith.constant 4 : index
    %c0_50 = arith.constant 0 : index
    %286 = vector.load %arg13[%c4, %c0_50] : memref<8x128xf32, #tpu.memory_space<vmem>>, vector<1x128xf32>
    tpu.vector_store %arg13[%c4, %c0_50], %285 {strides = array<i32>} : memref<8x128xf32, #tpu.memory_space<vmem>>, vector<1x128xf32>,
    %287 = arith.mulf %191, %282 : vector<16x128xf32>
    %288 = arith.addf %287, %208 : vector<16x128xf32>
    %289 = arith.mulf %288, %209 : vector<16x128xf32>
    %cst_51 = arith.constant dense<0.000000e+00> : vector<128xf32>
    %290 = vector.multi_reduction <add>, %289, %cst_51 [0] : vector<16x128xf32> to vector<128xf32>
    %291 = vector.shape_cast %290 : vector<128xf32> to vector<1x128xf32>
    %c5 = arith.constant 5 : index
    %c0_52 = arith.constant 0 : index
    %292 = vector.load %arg13[%c5, %c0_52] : memref<8x128xf32, #tpu.memory_space<vmem>>, vector<1x128xf32>
    tpu.vector_store %arg13[%c5, %c0_52], %291 {strides = array<i32>} : memref<8x128xf32, #tpu.memory_space<vmem>>, vector<1x128xf32>,
    %293 = arith.mulf %214, %288 : vector<16x128xf32>
    %294 = arith.addf %293, %231 : vector<16x128xf32>
    %295 = arith.mulf %294, %232 : vector<16x128xf32>
    %cst_53 = arith.constant dense<0.000000e+00> : vector<128xf32>
    %296 = vector.multi_reduction <add>, %295, %cst_53 [0] : vector<16x128xf32> to vector<128xf32>
    %297 = vector.shape_cast %296 : vector<128xf32> to vector<1x128xf32>
    %c6 = arith.constant 6 : index
    %c0_54 = arith.constant 0 : index
    %298 = vector.load %arg13[%c6, %c0_54] : memref<8x128xf32, #tpu.memory_space<vmem>>, vector<1x128xf32>
    tpu.vector_store %arg13[%c6, %c0_54], %297 {strides = array<i32>} : memref<8x128xf32, #tpu.memory_space<vmem>>, vector<1x128xf32>,
    %299 = arith.mulf %237, %294 : vector<16x128xf32>
    %300 = arith.addf %299, %254 : vector<16x128xf32>
    %301 = arith.mulf %300, %255 : vector<16x128xf32>
    %cst_55 = arith.constant dense<0.000000e+00> : vector<128xf32>
    %302 = vector.multi_reduction <add>, %301, %cst_55 [0] : vector<16x128xf32> to vector<128xf32>
    %303 = vector.shape_cast %302 : vector<128xf32> to vector<1x128xf32>
    %c7 = arith.constant 7 : index
    %c0_56 = arith.constant 0 : index
    %304 = vector.load %arg13[%c7, %c0_56] : memref<8x128xf32, #tpu.memory_space<vmem>>, vector<1x128xf32>
    tpu.vector_store %arg13[%c7, %c0_56], %303 {strides = array<i32>} : memref<8x128xf32, #tpu.memory_space<vmem>>, vector<1x128xf32>,
    %c0_57 = arith.constant 0 : index
    %c0_58 = arith.constant 0 : index
    %305 = vector.load %arg13[%c0_57, %c0_58] : memref<8x128xf32, #tpu.memory_space<vmem>>, vector<8x128xf32>
    %c0_59 = arith.constant 0 : index
    %c0_60 = arith.constant 0 : index
    %306 = vector.load %arg10[%c0_59, %c0_60] : memref<1x128xf32, #tpu.memory_space<vmem>>, vector<1x128xf32>
    %307 = vector.broadcast %306 : vector<1x128xf32> to vector<8x128xf32>
    %308 = arith.mulf %48, %307 : vector<8x128xf32>
    %309 = arith.addf %305, %308 : vector<8x128xf32>
    %cst_61 = arith.constant 0.000000e+00 : f32
    %310 = vector.broadcast %cst_61 : f32 to vector<8x128xf32>
    %311 = arith.subf %310, %6 : vector<8x128xf32>
    %312 = math.exp %311 : vector<8x128xf32>
    %cst_62 = arith.constant 1.000000e+00 : f32
    %313 = vector.broadcast %cst_62 : f32 to vector<8x128xf32>
    %314 = arith.addf %313, %312 : vector<8x128xf32>
    %315 = tpu.reciprocal %314 {approx = true} : vector<8x128xf32> -> vector<8x128xf32>
    %316 = arith.mulf %6, %315 : vector<8x128xf32>
    %317 = arith.mulf %309, %316 : vector<8x128xf32>
    %318 = arith.truncf %317 : vector<8x128xf32> to vector<8x128xbf16>
    %c0_63 = arith.constant 0 : index
    %c0_64 = arith.constant 0 : index
    %319 = vector.load %arg11[%c0_63, %c0_64] : memref<128x64xbf16, #tpu.memory_space<vmem>>, vector<128x64xbf16>
    %cst_65 = arith.constant dense<0.000000e+00> : vector<8x64xf32>
    %320 = tpu.matmul %318, %319, %cst_65 {dimension_numbers = #tpu.dot_dimension_numbers<[1], [0], [0], [1], [0, 0, 1, 1], [], []>} : vector<8x128xbf16>, vector<128x64xbf16>, vector<8x64xf32> -> vector<8x64xf32>
    %c0_66 = arith.constant 0 : index
    %c0_67 = arith.constant 0 : index
    %c0_68 = arith.constant 0 : index
    %321 = vector.load %arg12[%c0_66, %c0_67, %c0_68] : memref<1x8x64xf32, #tpu.memory_space<vmem>>, vector<1x8x64xf32>
    %322 = vector.shape_cast %321 : vector<1x8x64xf32> to vector<8x64xf32>
    %323 = vector.shape_cast %320 : vector<8x64xf32> to vector<1x8x64xf32>
    tpu.vector_store %arg12[%c0_66, %c0_67, %c0_68], %323 {strides = array<i32>} : memref<1x8x64xf32, #tpu.memory_space<vmem>>, vector<1x8x64xf32>,
    return
  }
  func.func @transform_0(%arg0: i32) -> (i32, i32, i32) {
    %c0_i32 = arith.constant 0 : i32
    %c0_i32_0 = arith.constant 0 : i32
    %c0_i32_1 = arith.constant 0 : i32
    return %arg0, %c0_i32, %c0_i32_0 : i32, i32, i32
  }
  func.func @transform_1(%arg0: i32) -> (i32, i32) {
    %c0_i32 = arith.constant 0 : i32
    %c0_i32_0 = arith.constant 0 : i32
    %c0_i32_1 = arith.constant 0 : i32
    return %c0_i32, %c0_i32_0 : i32, i32
  }
  func.func @transform_2(%arg0: i32) -> (i32, i32) {
    %c0_i32 = arith.constant 0 : i32
    %c0_i32_0 = arith.constant 0 : i32
    %c0_i32_1 = arith.constant 0 : i32
    return %c0_i32, %c0_i32_0 : i32, i32
  }
  func.func @transform_3(%arg0: i32) -> (i32, i32) {
    %c0_i32 = arith.constant 0 : i32
    %c0_i32_0 = arith.constant 0 : i32
    %c0_i32_1 = arith.constant 0 : i32
    return %c0_i32, %c0_i32_0 : i32, i32
  }
  func.func @transform_4(%arg0: i32) -> (i32, i32) {
    %c0_i32 = arith.constant 0 : i32
    %c0_i32_0 = arith.constant 0 : i32
    %c0_i32_1 = arith.constant 0 : i32
    return %c0_i32, %c0_i32_0 : i32, i32
  }
  func.func @transform_5(%arg0: i32) -> (i32, i32) {
    %c0_i32 = arith.constant 0 : i32
    %c0_i32_0 = arith.constant 0 : i32
    %c0_i32_1 = arith.constant 0 : i32
    return %c0_i32, %c0_i32_0 : i32, i32
  }
  func.func @transform_6(%arg0: i32) -> (i32, i32) {
    %c0_i32 = arith.constant 0 : i32
    %c0_i32_0 = arith.constant 0 : i32
    %c0_i32_1 = arith.constant 0 : i32
    return %c0_i32, %c0_i32_0 : i32, i32
  }
  func.func @transform_7(%arg0: i32) -> (i32, i32) {
    %c0_i32 = arith.constant 0 : i32
    %c0_i32_0 = arith.constant 0 : i32
    %c0_i32_1 = arith.constant 0 : i32
    return %c0_i32, %c0_i32_0 : i32, i32
  }
  func.func @transform_8(%arg0: i32) -> (i32, i32) {
    %c0_i32 = arith.constant 0 : i32
    %c0_i32_0 = arith.constant 0 : i32
    %c0_i32_1 = arith.constant 0 : i32
    return %c0_i32, %c0_i32_0 : i32, i32
  }
  func.func @transform_9(%arg0: i32) -> (i32, i32) {
    %c0_i32 = arith.constant 0 : i32
    %c0_i32_0 = arith.constant 0 : i32
    %c0_i32_1 = arith.constant 0 : i32
    return %c0_i32, %c0_i32_0 : i32, i32
  }
  func.func @transform_10(%arg0: i32) -> (i32, i32) {
    %c0_i32 = arith.constant 0 : i32
    %c0_i32_0 = arith.constant 0 : i32
    %c0_i32_1 = arith.constant 0 : i32
    return %c0_i32, %c0_i32_0 : i32, i32
  }
  func.func @transform_11(%arg0: i32) -> (i32, i32, i32) {
    %c0_i32 = arith.constant 0 : i32
    %c0_i32_0 = arith.constant 0 : i32
    %c0_i32_1 = arith.constant 0 : i32
    return %arg0, %c0_i32, %c0_i32_0 : i32, i32, i32
  }
}

</mosaic_0001>

<bundles_post_ra>
// kernel: tpu_custom_call.1
= control target key start
LH: loop header
LB: loop body
LE: loop exit
PB: predicated region body
PF: predicated region fallthrough
CT: control target
= control target key end

     0   :  { %16 = vsyncpa [#allocation4], 0  ;;  %s2485_s0 = inlined_call_operand.hbm [shape: f32[1,8,64], index: 0, kind: input, shape index: {}]   ;;  %s2486_s1 = inlined_call_operand.vmem [shape: bf16[64,256], index: 1, kind: input, shape index: {}]   ;;  %s2487_s2 = inlined_call_operand.vmem [shape: f32[4,128], index: 2, kind: input, shape index: {}]   ;;  %s2488_s3 = inlined_call_operand.vmem [shape: f32[1,128], index: 3, kind: input, shape index: {}]   ;;  %s2489_s4 = inlined_call_operand.hbm [shape: bf16[128,128], index: 4, kind: input, shape index: {}]   ;;  %s2490_s5 = inlined_call_operand.hbm [shape: f32[1,128], index: 5, kind: input, shape index: {}]   ;;  %s2491_s6 = inlined_call_operand.hbm [shape: bf16[128,128], index: 6, kind: input, shape index: {}]   ;;  %s2492_s7 = inlined_call_operand.vmem [shape: bf16[64,128], index: 7, kind: input, shape index: {}]   ;;  %s2493_s8 = inlined_call_operand.hbm [shape: f32[16,128], index: 8, kind: input, shape index: {}]   ;;  %s2494_s9 = inlined_call_operand.hbm [shape: f32[1,128], index: 9, kind: input, shape index: {}]   ;;  %s2495_s10 = inlined_call_operand.vmem [shape: bf16[128,64], index: 10, kind: input, shape index: {}]   ;;  %s2496_s11 = inlined_call_operand.hbm [shape: f32[1,8,64], index: 11, kind: output, shape index: {}]  }
   0x1   :  { %17 = vsyncpa [#allocation7], 0 }
   0x2   :  { %18 = vsyncpa [#allocation10], 0 }
   0x3   :  { %19 = vsyncpa [#allocation13], 0 }
   0x4   :  { %20 = vsyncpa [#allocation5], 0  ;;  %s1753_s17 = smov [#allocation6]   ;;  %s1589_s21 = scalar_lea.hbm %s2489_s4, 1024 }
   0x5   :  { %s42_s18 = sshll.u32 %s1753_s17, 4  ;;  %p1590_p0 = scmp.ne.s32.totalorder %s2489_s4, %s1589_s21  ;;  %s43_s18 = int_to_ptr.vmem [resolvable:$true] %s42_s18 }
   0x6   :  { %p1593_p1 = scmp.lt.u32.totalorder %s1589_s21, %s2489_s4 }
   0x8   :  { %p1595_p2 = pnand %p1593_p1, %p1590_p0 }
   0xa   :  { %1598 = shalt.err (!%p1595_p2)
}
   0xb   :  { %s1599_s26 = scalar_lea.vmem %s43_s18, 1024  ;;  %p1604_p4 = scmp.lt.s32.totalorder %s43_s18, %s43_s18 }
   0xc   :  { %p1600_p3 = scmp.ne.s32.totalorder %s43_s18, %s1599_s26  ;;  %p1605_p5 = scmp.lt.s32.totalorder %s1599_s26, %s1599_s26 }
   0xe   :  { %p1606_p6 = por %p1605_p5, %p1604_p4 }
  0x10   :  { %p1607_p7 = pnand %p1606_p6, %p1600_p3 }
  0x12   :  { %1610 = shalt.err (!%p1607_p7)
}
  0x13   :  { %s1754_s27 = smov 64   ;;  %s1755_s28 = smov 4  }
  0x14   :  { %48 = dma.hbm_to_vmem [thread:$0]  %s2489_s4, 1024, %s43_s18, [#allocation7], %s1754_s27, %s1754_s27, %s1755_s28  }
  0x15   :  { %s1756_s12 = smov [#allocation9]   ;;  %s1757_s14 = smov [#allocation3]  }
  0x16   :  { %s64_s13 = sshll.u32 %s1756_s12, 4  ;;  %s27_s15 = sshll.u32 %s1757_s14, 4  ;;  %s65_s13 = int_to_ptr.vmem [resolvable:$true] %s64_s13  ;;  %s28_s15 = int_to_ptr.vmem [resolvable:$true] %s27_s15 }
  0x17   :  { %s1611_s19 = scalar_lea.hbm %s2491_s6, 1024 }
  0x18   :  { %p1612_p8 = scmp.ne.s32.totalorder %s2491_s6, %s1611_s19  ;;  %p1615_p9 = scmp.lt.u32.totalorder %s1611_s19, %s2491_s6 }
  0x1a   :  { %p1617_p10 = pnand %p1615_p9, %p1612_p8 }
  0x1c   :  { %1620 = shalt.err (!%p1617_p10)
}
  0x1d   :  { %s1621_s4 = scalar_lea.vmem %s65_s13, 1024  ;;  %p1626_p12 = scmp.lt.s32.totalorder %s65_s13, %s65_s13 }
  0x1e   :  { %p1622_p11 = scmp.ne.s32.totalorder %s65_s13, %s1621_s4  ;;  %p1627_p13 = scmp.lt.s32.totalorder %s1621_s4, %s1621_s4 }
  0x20   :  { %p1628_p0 = por %p1627_p13, %p1626_p12 }
  0x22   :  { %p1629_p1 = pnand %p1628_p0, %p1622_p11 }
  0x24   :  { %1632 = shalt.err (!%p1629_p1)
}
  0x25   :  { %70 = dma.hbm_to_vmem [thread:$0]  %s2491_s6, 1024, %s65_s13, [#allocation10], %s1754_s27, %s1754_s27, %s1755_s28  }
  0x26   :  { %s1633_s29 = scalar_lea.hbm %s2485_s0, 128 }
  0x27   :  { %p1634_p2 = scmp.ne.s32.totalorder %s2485_s0, %s1633_s29  ;;  %p1637_p3 = scmp.lt.u32.totalorder %s1633_s29, %s2485_s0 }
  0x29   :  { %p1639_p4 = pnand %p1637_p3, %p1634_p2 }
  0x2b   :  { %1642 = shalt.err (!%p1639_p4)
}
  0x2c   :  { %s1643_s17 = scalar_lea.vmem %s28_s15, 128  ;;  %p1648_p6 = scmp.lt.s32.totalorder %s28_s15, %s28_s15 }
  0x2d   :  { %p1644_p5 = scmp.ne.s32.totalorder %s28_s15, %s1643_s17  ;;  %p1649_p7 = scmp.lt.s32.totalorder %s1643_s17, %s1643_s17 }
  0x2f   :  { %p1650_p8 = por %p1649_p7, %p1648_p6 }
  0x31   :  { %p1651_p9 = pnand %p1650_p8, %p1644_p5 }
  0x33   :  { %1654 = shalt.err (!%p1651_p9)
}
  0x34   :  { %30 = dma.hbm_to_vmem [thread:$0]  %s2485_s0, 128, %s28_s15, [#allocation4]  }
  0x35   :  { %s1758_s28 = smov [#allocation8]   ;;  %s1759_s19 = smov [#allocation11]  }
  0x36   :  { %s55_s13 = sshll.u32 %s1758_s28, 4  ;;  %s78_s20 = sshll.u32 %s1759_s19, 4  ;;  %s56_s13 = int_to_ptr.vmem [resolvable:$true] %s55_s13  ;;  %s79_s20 = int_to_ptr.vmem [resolvable:$true] %s78_s20 }
  0x37   :  { %s1655_s23 = scalar_lea.hbm %s2490_s5, 16 }
  0x38   :  { %p1656_p10 = scmp.ne.s32.totalorder %s2490_s5, %s1655_s23  ;;  %p1659_p11 = scmp.lt.u32.totalorder %s1655_s23, %s2490_s5 }
  0x3a   :  { %p1661_p12 = pnand %p1659_p11, %p1656_p10 }
  0x3c   :  { %1664 = shalt.err (!%p1661_p12)
}
  0x3d   :  { %s1665_s0 = scalar_lea.vmem %s56_s13, 16  ;;  %s1669_s15 = scalar_lea.vmem %s56_s13, 32 }
  0x3e   :  { %p1666_p13 = scmp.ne.s32.totalorder %s56_s13, %s1665_s0  ;;  %p1670_p0 = scmp.lt.s32.totalorder %s56_s13, %s56_s13 }
  0x3f   :  { %p1671_p1 = scmp.lt.s32.totalorder %s1669_s15, %s1665_s0 }
  0x41   :  { %p1672_p2 = por %p1671_p1, %p1670_p0 }
  0x43   :  { %p1673_p3 = pnand %p1672_p2, %p1666_p13 }
  0x45   :  { %1676 = shalt.err (!%p1673_p3)
}
  0x46   :  { %58 = dma.hbm_to_vmem [thread:$0]  %s2490_s5, 16, %s56_s13, [#allocation7]  }
  0x47   :  { %s1677_s14 = scalar_lea.hbm %s2493_s8, 256 }
  0x48   :  { %p1678_p4 = scmp.ne.s32.totalorder %s2493_s8, %s1677_s14  ;;  %p1681_p5 = scmp.lt.u32.totalorder %s1677_s14, %s2493_s8 }
  0x4a   :  { %p1683_p6 = pnand %p1681_p5, %p1678_p4 }
  0x4c   :  { %1686 = shalt.err (!%p1683_p6)
}
  0x4d   :  { %s1687_s28 = scalar_lea.vmem %s79_s20, 256  ;;  %p1692_p8 = scmp.lt.s32.totalorder %s79_s20, %s79_s20 }
  0x4e   :  { %p1688_p7 = scmp.ne.s32.totalorder %s79_s20, %s1687_s28  ;;  %p1693_p9 = scmp.lt.s32.totalorder %s1687_s28, %s1687_s28 }
  0x50   :  { %p1694_p10 = por %p1693_p9, %p1692_p8 }
  0x52   :  { %p1695_p11 = pnand %p1694_p10, %p1688_p7 }
  0x54   :  { %1698 = shalt.err (!%p1695_p11)
}
  0x55   :  { %s1760_s5 = smov 128   ;;  %s1761_s13 = smov 8  }
  0x56   :  { %84 = dma.hbm_to_vmem [thread:$0]  %s2493_s8, 256, %s79_s20, [#allocation10], %s1760_s5, %s1760_s5, %s1761_s13  }
  0x57   :  { %s1762_s22 = smov [#allocation12]   ;;  %s1699_s24 = scalar_lea.hbm %s2494_s9, 16 }
  0x58   :  { %s91_s23 = sshll.u32 %s1762_s22, 4  ;;  %p1700_p12 = scmp.ne.s32.totalorder %s2494_s9, %s1699_s24  ;;  %s92_s23 = int_to_ptr.vmem [resolvable:$true] %s91_s23 }
  0x59   :  { %p1703_p13 = scmp.lt.u32.totalorder %s1699_s24, %s2494_s9 }
  0x5b   :  { %p1705_p0 = pnand %p1703_p13, %p1700_p12 }
  0x5d   :  { %1708 = shalt.err (!%p1705_p0)
}
  0x5e   :  { %s1709_s29 = scalar_lea.vmem %s92_s23, 16  ;;  %s1713_s8 = scalar_lea.vmem %s92_s23, 32 }
  0x5f   :  { %p1710_p1 = scmp.ne.s32.totalorder %s92_s23, %s1709_s29  ;;  %p1714_p2 = scmp.lt.s32.totalorder %s92_s23, %s92_s23 }
  0x60   :  { %p1715_p3 = scmp.lt.s32.totalorder %s1713_s8, %s1709_s29 }
  0x62   :  { %p1716_p4 = por %p1715_p3, %p1714_p2 }
  0x64   :  { %p1717_p5 = pnand %p1716_p4, %p1710_p1 }
  0x66   :  { %1720 = shalt.err (!%p1717_p5)
}
  0x67   :  { %94 = dma.hbm_to_vmem [thread:$0]  %s2494_s9, 16, %s92_s23, [#allocation13]  }
  0x68   :  { %1743 = dma.done.wait [#allocation4], 128  }
  0x69   :  { %1744 = vsyncadd [#allocation4], 4294967168 }
  0x6a   :  { %1745 = dma.done.wait [#allocation7], 1040  }
  0x6b   :  { %1746 = vsyncadd [#allocation7], 4294966256 }
  0x6c   :  { %1747 = dma.done.wait [#allocation10], 1280  }
  0x6d   :  { %1748 = vsyncadd [#allocation10], 4294966016 }
  0x6e   :  { %1749 = dma.done.wait [#allocation13], 16  }
  0x6f   :  { %1750 = vsyncadd [#allocation13], 4294967280  ;;  %v1763_v0 = vmov 0   ;;  %v1505_v1 = vld [vmem:[%s2486_s1 + $0x4] ss:$8 sps:$4 sm:$0xff]   ;;  %vm166_vm0 = vcmask 523264   ;;  %v211_v28 = vlaneseq }
  0x70   :  { %202 = vmatprep.mubr.bf16.mxu0 %v1763_v0  ;;  %1450 = vset.pattern.permute.xlu1 %v1763_v0  ;;  %v1507_v2 = vld [vmem:[%s2486_s1] ss:$8 sps:$4 sm:$0xff]   ;;  %v1508_v3 = vld [vmem:[%s2486_s1 + $0x14] ss:$8 sps:$4 sm:$0xff]   ;;  %v1510_v4 = vld [vmem:[%s2486_s1 + $0x10] ss:$8 sps:$4 sm:$0xff]  }
  0x71   :  { %170 = vmatprep.subr.bf16.mxu0 %v1505_v1  ;;  %v1511_v5 = vld [vmem:[%s2486_s1 + $0x24] ss:$8 sps:$4 sm:$0xff]   ;;  %v1513_v6 = vld [vmem:[%s2486_s1 + $0x20] ss:$8 sps:$4 sm:$0xff]   ;;  %v1514_v7 = vld [vmem:[%s2486_s1 + $0x34] ss:$8 sps:$4 sm:$0xff]  }
  0x72   :  { %171 = vmatpush1.bf16.msra.mxu0 %v1507_v2  ;;  %v1516_v8 = vld [vmem:[%s2486_s1 + $0x30] ss:$8 sps:$4 sm:$0xff]   ;;  %v116_v9 = vld [vmem:[#allocation3] sm:$0xff]  ;;  %v2501_v12 = vmov 0.0   ;;  %v1521_v16 = vld [vmem:[#allocation6 + $0x10] sm:$0xff]   ;;  %vm1765_vm1 = vmmov 0  }
  0x73   :  { %172 = vmatprep.subr.bf16.mxu0 %v1508_v3  ;;  %v117_v10 = vpack.c.bf16 %v116_v9, %v116_v9  ;;  %v1517_v11 = vld [vmem:[#allocation6] sm:$0xff]   ;;  %1359 = vmatprep.subr.bf16.mxu1 %v2501_v12  ;;  %v1519_v14 = vld [vmem:[#allocation6 + $0x8] sm:$0xff]   ;;  %v1522_v17 = vld [vmem:[#allocation9 + $0x10] sm:$0xff]   ;;  %v1954_v29 = vshrl.u32 %v211_v28, 7 }
  0x74   :  { %1360 = vmatpush3.bf16.msra.mxu1 %v1517_v11  ;;  %v1518_v13 = vld [vmem:[#allocation9] sm:$0xff]   ;;  %v1520_v15 = vld [vmem:[#allocation9 + $0x8] sm:$0xff]   ;;  %v1523_v18 = vld [vmem:[#allocation6 + $0x18] sm:$0xff]   ;;  %1375 = vmatprep.mubr.msk.bf16.mxu1 %vm1765_vm1, %v2501_v12 }
  0x75   :  { %1361 = vmatprep.subr.bf16.mxu1 %v2501_v12  ;;  %v1524_v19 = vld [vmem:[#allocation9 + $0x18] sm:$0xff]   ;;  %v1526_v21 = vld [vmem:[#allocation9 + $0x20] sm:$0xff]   ;;  %v1528_v23 = vld [vmem:[#allocation9 + $0x28] sm:$0xff]   ;;  %vm220_vm2 = vcmp.ge.s32.totalorder %v1954_v29, 3  ;;  %vm230_vm3 = vcmp.ge.s32.totalorder %v1954_v29, 2  ;;  %vm240_vm4 = vcmp.ge.s32.totalorder %v1954_v29, 1 }
  0x76   :  { %173 = vmatpush1.bf16.msra.mxu0 %v1510_v4  ;;  %v1525_v20 = vld [vmem:[#allocation6 + $0x20] sm:$0xff]   ;;  %v1527_v22 = vld [vmem:[#allocation6 + $0x28] sm:$0xff]   ;;  %v1529_v24 = vld [vmem:[#allocation6 + $0x30] sm:$0xff]  }
  0x77   :  { %174 = vmatprep.subr.bf16.mxu0 %v1511_v5  ;;  %v1530_v25 = vld [vmem:[#allocation9 + $0x30] sm:$0xff]   ;;  %v1532_v27 = vld [vmem:[#allocation9 + $0x38] sm:$0xff]   ;;  %v1293_v33 = vld [vmem:[%s2487_s2] ss:$0 sm:$0xff] }
  0x78   :  { %1362 = vmatpush3.bf16.msra.mxu1 %v1519_v14  ;;  %v1531_v26 = vld [vmem:[#allocation6 + $0x38] sm:$0xff]   ;;  %v1292_v31 = vld [vmem:[%s2487_s2 + $0x3] ss:$0 sm:$0xff]  ;;  %v1294_v40 = vld [vmem:[%s2487_s2 + $0x1] ss:$0 sm:$0xff] }
  0x79   :  { %1363 = vmatprep.subr.bf16.mxu1 %v2501_v12  ;;  %v1295_v45 = vld [vmem:[%s2487_s2 + $0x2] ss:$0 sm:$0xff]  ;;  %v1296_v50 = vld [vmem:[%s2488_s3] ss:$0 sm:$0xff]  ;;  %v1297_v60 = vld [vmem:[#allocation8] ss:$0 sm:$0xff] }
  0x7a   :  { %175 = vmatpush1.bf16.msra.mxu0 %v1513_v6 }
  0x7b   :  { %176 = vmatprep.subr.bf16.mxu0 %v1514_v7 }
  0x7c   :  { %1364 = vmatpush3.bf16.msra.mxu1 %v1521_v16  ;;  %v1535_v16 = vld [vmem:[%s2492_s7 + $0x10] sm:$0xff]  }
  0x7d   :  { %1365 = vmatprep.subr.bf16.mxu1 %v2501_v12 }
  0x7e   :  { %177 = vmatpush1.bf16.msra.mxu0 %v1516_v8 }
  0x7f   :  { %1379 = vmatprep.subr.bf16.mxu0 %v2501_v12 }
  0x80   :  { %1366 = vmatpush3.bf16.msra.mxu1 %v1523_v18  ;;  %v1766_v18 = vmov 3  }
  0x81   :  { %1291 = vmatmul.mubr.msk.bf16.vlgmr.msra.gmra.mrb[0].mxu0 %vm166_vm0, %v117_v10  ;;  %1367 = vmatprep.subr.bf16.mxu1 %v2501_v12 }
  0x82   :  { %1380 = vmatpush3.bf16.msra.mxu0 %v1518_v13  ;;  %1395 = vmatprep.mubr.msk.bf16.mxu0 %vm1765_vm1, %v2501_v12  ;;  %v1533_v13 = vld [vmem:[%s2492_s7] sm:$0xff]  }
  0x83   :  { %1381 = vmatprep.subr.bf16.mxu0 %v2501_v12  ;;  %1452 = vset.pattern.permute.xlu0 %v1766_v18 }
  0x84   :  { %1368 = vmatpush3.bf16.msra.mxu1 %v1525_v20 }
  0x85   :  { %1369 = vmatprep.subr.bf16.mxu1 %v2501_v12 }
  0x86   :  { %1382 = vmatpush3.bf16.msra.mxu0 %v1520_v15  ;;  %v1534_v15 = vld [vmem:[%s2492_s7 + $0x8] sm:$0xff]  }
  0x87   :  { %1383 = vmatprep.subr.bf16.mxu0 %v2501_v12 }
  0x88   :  { %1370 = vmatpush3.bf16.msra.mxu1 %v1527_v22 }
  0x89   :  { %1371 = vmatprep.subr.bf16.mxu1 %v2501_v12 }
  0x8a   :  { %1384 = vmatpush3.bf16.msra.mxu0 %v1522_v17  ;;  %v1536_v17 = vld [vmem:[%s2492_s7 + $0x18] sm:$0xff]  }
  0x8b   :  { %1385 = vmatprep.subr.bf16.mxu0 %v2501_v12 }
  0x8c   :  { %1372 = vmatpush3.bf16.msra.mxu1 %v1529_v24 }
  0x8d   :  { %1373 = vmatprep.subr.bf16.mxu1 %v2501_v12 }
  0x8e   :  { %1386 = vmatpush3.bf16.msra.mxu0 %v1524_v19 }
  0x8f   :  { %1387 = vmatprep.subr.bf16.mxu0 %v2501_v12 }
  0x90   :  { %1374 = vmatpush3.bf16.msra.mxu1 %v1531_v26 }
  0x91   :  { %1409 = vmatprep.subr.bf16.mxu1 %v2501_v12 }
  0x92   :  { %1388 = vmatpush3.bf16.msra.mxu0 %v1526_v21 }
  0x93   :  { %1389 = vmatprep.subr.bf16.mxu0 %v2501_v12 }
  0x96   :  { %1390 = vmatpush3.bf16.msra.mxu0 %v1528_v23 }
  0x97   :  { %1391 = vmatprep.subr.bf16.mxu0 %v2501_v12 }
  0x9a   :  { %1392 = vmatpush3.bf16.msra.mxu0 %v1530_v25 }
  0x9b   :  { %1393 = vmatprep.subr.bf16.mxu0 %v2501_v12 }
  0x9e   :  { %1394 = vmatpush3.bf16.msra.mxu0 %v1532_v27  ;;  %v1767_v27 = vmov 2  }
 0x154   :  { %v204_v30 = vpop.f32.mrb[0].mxu0 }
 0x155   :  { %v219_v32 = vrot.slane %v204_v30, 5  ;;  %v229_v34 = vrot.slane %v204_v30, 6  ;;  %v239_v35 = vrot.slane %v204_v30, 7  ;;  %v1964_v36 = vpop.f32.mrb[1].mxu0  ;;  %v218_v42 = vmul.f32 %v1292_v31, %v204_v30 }
 0x156   :  { %2504 = vst [vmem:[#allocation20_spill] sm:$0xff] %v1964_v36  ;;  %v208_v37 = vpop.f32.mrb[2].mxu0  ;;  %v1768_v31 = vmov 4  }
 0x157   :  { %v221_v38 = vsel %vm220_vm2, %v219_v32, 0.0  ;;  %v231_v39 = vsel %vm230_vm3, %v229_v34, 0.0  ;;  %v209_v41 = vpop.f32.mrb[3].mxu0  ;;  %v241_v44 = vsel %vm240_vm4, %v239_v35, 0.0  ;;  %v1769_v34 = vmov 7  }
 0x158   :  { %v227_v43 = vmul.f32 %v1293_v33, %v221_v38  ;;  %v237_v47 = vmul.f32 %v1294_v40, %v231_v39  ;;  %v247_v49 = vmul.f32 %v1295_v45, %v241_v44  ;;  %v1770_v35 = vmov 6  }
 0x159   :  { %v1771_v37 = vmov 1   ;;  %v1772_v38 = vmov 5   ;;  %v762_v44 = vsub.s32 3, %v1954_v29 }
 0x15a   :  { %v228_v46 = vadd.f32 %v227_v43, %v218_v42 }
 0x15c   :  { %v238_v48 = vadd.f32 %v237_v47, %v228_v46 }
 0x15e   :  { %v248_v51 = vadd.f32 %v247_v49, %v238_v48  ;;  %v708_v49 = vsub.s32 2, %v1954_v29 }
 0x160   :  { %v256_v52 = vadd.f32 %v1296_v50, %v248_v51  ;;  %v2497_v50 = vsub.s32 7, %v1954_v29 }
 0x162   :  { %v257_v53 = vsub.f32 0.0, %v256_v52 }
 0x164   :  { %v258_v54 = vmul.f32 1.442695, %v257_v53 }
 0x166   :  { %1545 = vpow2.f32 %v258_v54 }
 0x170   :  { %v1546_v55 = vpop.eup %1545 }
 0x171   :  { %v260_v56 = vadd.f32 1.0, %v1546_v55 }
 0x173   :  { %1547 = vrcp.f32 %v260_v56 }
 0x17d   :  { %v1548_v57 = vpop.eup %1547 }
 0x17e   :  { %v1976_v58 = vmul.f32 %v1548_v57, %v256_v52  ;;  %v816_v57 = vsub.s32 4, %v1954_v29 }
 0x180   :  { %2505 = vst [vmem:[#allocation21_spill] sm:$0xff] %v1976_v58  ;;  %v264_v59 = vpack.c.bf16 %v1976_v58, %v1976_v58 }
 0x182   :  { %1376 = vmatmul.mubr.bf16.vlgmr.msra.gmra.mrb[0].mxu1 %v264_v59  ;;  %1399 = vmatprep.subr.bf16.mxu0 %v264_v59 }
 0x183   :  { %1425 = vmatprep.mubr.msk.bf16.mxu1 %vm1765_vm1, %v2501_v12 }
 0x255   :  { %v370_v61 = vpop.f32.mrb[0].mxu1 }
 0x256   :  { %v371_v62 = vadd.f32 %v1297_v60, %v370_v61  ;;  %v1377_v63 = vpop.f32.mrb[1].mxu1 }
 0x257   :  { %v373_v1 = vpop.f32.mrb[2].mxu1  ;;  %v2498_v63 = vsub.s32 6, %v1954_v29 }
 0x258   :  { %v377_v2 = vand.u32 2147483647, %v371_v62  ;;  %v1378_v3 = vpop.f32.mrb[3].mxu1  ;;  %v376_v9 = vmax.f32 %v371_v62, 0.0 }
 0x25a   :  { %v378_v4 = vsub.f32 0.0, %v377_v2 }
 0x25c   :  { %v379_v5 = vmul.f32 1.442695, %v378_v4 }
 0x25e   :  { %1549 = vpow2.f32 %v379_v5 }
 0x268   :  { %v1550_v6 = vpop.eup %1549 }
 0x269   :  { %v381_v7 = vadd.f32 1.0, %v1550_v6 }
 0x26b   :  { %1551 = vlog2.f32 %v381_v7 }
 0x275   :  { %v1552_v8 = vpop.eup %1551 }
 0x276   :  { %v383_v10 = vmul.f32 0.6931472, %v1552_v8 }
 0x278   :  { %v384_v11 = vadd.f32 %v383_v10, %v376_v9  ;;  %v654_v10 = vsub.s32 1, %v1954_v29 }
 0x27a   :  { %v385_v14 = vpack.c.bf16 %v384_v11, %v384_v11 }
 0x27c   :  { %1396 = vmatmul.mubr.bf16.vlgmr.msra.gmra.mrb[4].mxu0 %v385_v14 }
 0x27d   :  { %1400 = vmatpush3.bf16.xpose.msra.mxu0 %v264_v59  ;;  %1401 = vmatprep.mubr.bf16.mxu0 %v1533_v13 }
 0x284   :  { %1402 = vmatmul.mubr.bf16.vlgmr.msra.gmra.mrb[8].mxu0 %v1534_v15 }
 0x285   :  { %1405 = vmatprep.mubr.bf16.mxu0 %v1535_v16 }
 0x28c   :  { %1406 = vmatmul.mubr.bf16.gmra.mrb[12].mxu0 %v1536_v17 }
 0x34f   :  { %v1995_v19 = vpop.f32.mrb[4].mxu0 }
 0x350   :  { %v1397_v20 = vpop.f32.mrb[5].mxu0  ;;  %v2094_v41 = vmul.f32 %v1995_v19, %v1976_v58 }
 0x351   :  { %v487_v21 = vpop.f32.mrb[6].mxu0  ;;  %v2499_v20 = vsub.s32 5, %v1954_v29 }
 0x352   :  { %v1398_v22 = vpop.f32.mrb[7].mxu0  ;;  %v2106_v45 = vrot.slane %v2094_v41, %v762_v44  ;;  %v2120_v51 = vrot.slane %v2094_v41, %v708_v49  ;;  %v2125_v52 = vrot.slane %v2094_v41, %v2497_v50  ;;  %v2139_v59 = vrot.slane %v2094_v41, %v816_v57 }
 0x353   :  { %v2152_v1 = vrot.slane %v2094_v41, %v2498_v63  ;;  %v2181_v11 = vrot.slane %v2094_v41, %v654_v10  ;;  %v2196_v21 = vrot.slane %v2094_v41, %v2499_v20 }
 0x357   :  { %v1997_v23 = vpop.f32.mrb[8].mxu0 }
 0x358   :  { %785 = vperm.xlu0 %1452, %v1997_v23   ;;  %618 = vperm.xlu1 %1450, %v1997_v23   ;;  %v2001_v24 = vpop.f32.mrb[9].mxu0 }
 0x359   :  { %v2003_v25 = vpop.f32.mrb[10].mxu0 }
 0x35a   :  { %v560_v26 = vpop.f32.mrb[11].mxu0 }
 0x35c   :  { %1454 = vset.pattern.permute.xlu0 %v1763_v0  ;;  %1451 = vset.pattern.permute.xlu1 %v1767_v27 }
 0x35d   :  { %731 = vperm.xlu1 %1451, %v1997_v23   ;;  %602 = vperm.xlu0 %1454, %v2001_v24  }
 0x35f   :  { %v2009_v28 = vpop.f32.mrb[12].mxu0 }
 0x360   :  { %v2011_v30 = vpop.f32.mrb[13].mxu0 }
 0x361   :  { %1453 = vset.pattern.permute.xlu1 %v1768_v31  ;;  %1456 = vset.pattern.permute.xlu0 %v1766_v18  ;;  %v2015_v32 = vpop.f32.mrb[14].mxu0 }
 0x362   :  { %839 = vperm.xlu1 %1453, %v1997_v23   ;;  %771 = vperm.xlu0 %1456, %v2001_v24   ;;  %v2019_v33 = vpop.f32.mrb[15].mxu0 }
 0x366   :  { %1455 = vset.pattern.permute.xlu1 %v1767_v27  ;;  %1459 = vset.pattern.permute.xlu0 %v1769_v34 }
 0x367   :  { %717 = vperm.xlu1 %1455, %v2001_v24   ;;  %987 = vperm.xlu0 %1459, %v2001_v24  }
 0x36b   :  { %1457 = vset.pattern.permute.xlu1 %v1768_v31  ;;  %1460 = vset.pattern.permute.xlu0 %v1763_v0 }
 0x36c   :  { %825 = vperm.xlu1 %1457, %v2001_v24   ;;  %623 = vperm.xlu0 %1460, %v2003_v25  }
 0x370   :  { %1458 = vset.pattern.permute.xlu1 %v1770_v35  ;;  %1462 = vset.pattern.permute.xlu0 %v1767_v27 }
 0x371   :  { %933 = vperm.xlu1 %1458, %v2001_v24   ;;  %735 = vperm.xlu0 %1462, %v2003_v25  }
 0x375   :  { %1461 = vset.pattern.permute.xlu1 %v1771_v37  ;;  %1464 = vset.pattern.permute.xlu0 %v1768_v31 }
 0x376   :  { %681 = vperm.xlu1 %1461, %v2003_v25   ;;  %843 = vperm.xlu0 %1464, %v2003_v25  }
 0x37a   :  { %1463 = vset.pattern.permute.xlu1 %v1766_v18  ;;  %1466 = vset.pattern.permute.xlu0 %v1763_v0 }
 0x37b   :  { %789 = vperm.xlu1 %1463, %v2003_v25   ;;  %607 = vperm.xlu0 %1466, %v560_v26  }
 0x37f   :  { %1465 = vset.pattern.permute.xlu1 %v1772_v38  ;;  %1468 = vset.pattern.permute.xlu0 %v1767_v27 }
 0x380   :  { %897 = vperm.xlu1 %1465, %v2003_v25   ;;  %721 = vperm.xlu0 %1468, %v560_v26  }
 0x384   :  { %1467 = vset.pattern.permute.xlu1 %v1771_v37  ;;  %1470 = vset.pattern.permute.xlu0 %v1768_v31 }
 0x385   :  { %667 = vperm.xlu1 %1467, %v560_v26   ;;  %829 = vperm.xlu0 %1470, %v560_v26  }
 0x389   :  { %1469 = vset.pattern.permute.xlu1 %v1766_v18  ;;  %1472 = vset.pattern.permute.xlu0 %v1770_v35 }
 0x38a   :  { %775 = vperm.xlu1 %1469, %v560_v26   ;;  %937 = vperm.xlu0 %1472, %v560_v26  }
 0x38e   :  { %1471 = vset.pattern.permute.xlu1 %v1772_v38  ;;  %1490 = vset.pattern.permute.xlu0 %v1766_v18 }
 0x38f   :  { %883 = vperm.xlu1 %1471, %v560_v26   ;;  %807 = vperm.xlu0 %1490, %v2015_v32  }
 0x393   :  { %1473 = vset.pattern.permute.xlu1 %v1769_v34  ;;  %1494 = vset.pattern.permute.xlu0 %v1770_v35 }
 0x394   :  { %991 = vperm.xlu1 %1473, %v560_v26   ;;  %951 = vperm.xlu0 %1494, %v2003_v25  }
 0x398   :  { %1474 = vset.pattern.permute.xlu1 %v1763_v0  ;;  %1495 = vset.pattern.permute.xlu0 %v1771_v37 }
 0x399   :  { %640 = vperm.xlu1 %1474, %v2009_v28   ;;  %663 = vperm.xlu0 %1495, %v2001_v24  }
 0x39d   :  { %1475 = vset.pattern.permute.xlu1 %v1771_v37  ;;  %677 = vperm.xlu0 %1495, %v1997_v23  }
 0x39e   :  { %695 = vperm.xlu1 %1475, %v2009_v28  }
 0x3a1   :  { %699 = vperm.xlu0 %1495, %v2015_v32  }
 0x3a2   :  { %1476 = vset.pattern.permute.xlu1 %v1767_v27 }
 0x3a3   :  { %749 = vperm.xlu1 %1476, %v2009_v28  }
 0x3a5   :  { %689 = vperm.xlu0 %1495, %v2019_v33  }
 0x3a7   :  { %1477 = vset.pattern.permute.xlu1 %v1766_v18 }
 0x3a8   :  { %803 = vperm.xlu1 %1477, %v2009_v28  }
 0x3a9   :  { %1498 = vset.pattern.permute.xlu0 %v1766_v18 }
 0x3aa   :  { %797 = vperm.xlu0 %1498, %v2019_v33  }
 0x3ac   :  { %1478 = vset.pattern.permute.xlu1 %v1768_v31 }
 0x3ad   :  { %857 = vperm.xlu1 %1478, %v2009_v28  }
 0x3ae   :  { %1501 = vset.pattern.permute.xlu0 %v1769_v34 }
 0x3af   :  { %1001 = vperm.xlu0 %1501, %v1997_v23  }
 0x3b1   :  { %1479 = vset.pattern.permute.xlu1 %v1772_v38 }
 0x3b2   :  { %911 = vperm.xlu1 %1479, %v2009_v28  }
 0x3b3   :  { %1502 = vset.pattern.permute.xlu0 %v1772_v38 }
 0x3b4   :  { %879 = vperm.xlu0 %1502, %v2001_v24  }
 0x3b6   :  { %1480 = vset.pattern.permute.xlu1 %v1763_v0 }
 0x3b7   :  { %628 = vperm.xlu1 %1480, %v2011_v30  }
 0x3b8   :  { %893 = vperm.xlu0 %1502, %v1997_v23  }
 0x3bb   :  { %1481 = vset.pattern.permute.xlu1 %v1771_v37 }
 0x3bc   :  { %685 = vperm.xlu1 %1481, %v2011_v30   ;;  %915 = vperm.xlu0 %1502, %v2015_v32  }
 0x3c0   :  { %1482 = vset.pattern.permute.xlu1 %v1767_v27  ;;  %905 = vperm.xlu0 %1502, %v2019_v33  }
 0x3c1   :  { %739 = vperm.xlu1 %1482, %v2011_v30  }
 0x3c4   :  { %1504 = vset.pattern.permute.xlu0 %v1769_v34 }
 0x3c5   :  { %1483 = vset.pattern.permute.xlu1 %v1766_v18  ;;  %1013 = vperm.xlu0 %1504, %v2019_v33  }
 0x3c6   :  { %793 = vperm.xlu1 %1483, %v2011_v30  }
 0x3c9   :  { %1023 = vperm.xlu0 %1504, %v2015_v32  }
 0x3ca   :  { %1484 = vset.pattern.permute.xlu1 %v1768_v31 }
 0x3cb   :  { %847 = vperm.xlu1 %1484, %v2011_v30  }
 0x3cf   :  { %1485 = vset.pattern.permute.xlu1 %v1772_v38  ;;  %v2225_v38 = vld [vmem:[#allocation11] sm:$0xff] }
 0x3d0   :  { %901 = vperm.xlu1 %1485, %v2011_v30  }
 0x3d4   :  { %1486 = vset.pattern.permute.xlu1 %v1770_v35 }
 0x3d5   :  { %955 = vperm.xlu1 %1486, %v2011_v30  }
 0x3d7   :  { %v2086_v39 = vpop.permute.xlu0 %785  ;;  %v2088_v40 = vpop.permute.xlu1 %618 }
 0x3d9   :  { %1487 = vset.pattern.permute.xlu1 %v1769_v34 }
 0x3da   :  { %1009 = vperm.xlu1 %1487, %v2011_v30  }
 0x3dc   :  { %v2096_v42 = vpop.permute.xlu1 %731  ;;  %v2098_v43 = vpop.permute.xlu0 %602 }
 0x3de   :  { %1488 = vset.pattern.permute.xlu1 %v1763_v0 }
 0x3df   :  { %645 = vperm.xlu1 %1488, %v2015_v32  }
 0x3e1   :  { %v2108_v46 = vpop.permute.xlu1 %839  ;;  %v772_v47 = vpop.permute.xlu0 %771 }
 0x3e2   :  { %v2111_v48 = vmul.f32 %v2106_v45, %v772_v47 }
 0x3e3   :  { %1489 = vset.pattern.permute.xlu1 %v1767_v27 }
 0x3e4   :  { %753 = vperm.xlu1 %1489, %v2015_v32  }
 0x3e6   :  { %v718_v53 = vpop.permute.xlu1 %717  ;;  %v988_v54 = vpop.permute.xlu0 %987 }
 0x3e7   :  { %v2128_v55 = vmul.f32 %v2120_v51, %v718_v53  ;;  %v2131_v56 = vmul.f32 %v2125_v52, %v988_v54 }
 0x3e8   :  { %1491 = vset.pattern.permute.xlu1 %v1768_v31 }
 0x3e9   :  { %861 = vperm.xlu1 %1491, %v2015_v32  }
 0x3eb   :  { %v826_v60 = vpop.permute.xlu1 %825  ;;  %v2141_v61 = vpop.permute.xlu0 %623 }
 0x3ec   :  { %v2144_v62 = vmul.f32 %v2139_v59, %v826_v60  ;;  %v2238_v60 = vrot.slane %v1995_v19, %v654_v10 }
 0x3ed   :  { %1492 = vset.pattern.permute.xlu1 %v1763_v0 }
 0x3ee   :  { %633 = vperm.xlu1 %1492, %v2019_v33   ;;  %v656_v10 = vmul.f32 %v2238_v60, %v2225_v38 }
 0x3f0   :  { %v934_v2 = vpop.permute.xlu1 %933  ;;  %v2154_v3 = vpop.permute.xlu0 %735  ;;  %v658_v50 = vmul.f32 1.442695, %v656_v10 }
 0x3f1   :  { %v2157_v4 = vmul.f32 %v2152_v1, %v934_v2 }
 0x3f2   :  { %1493 = vset.pattern.permute.xlu1 %v1770_v35 }
 0x3f3   :  { %947 = vperm.xlu1 %1493, %v1997_v23  }
 0x3f5   :  { %v2161_v0 = vpop.permute.xlu1 %681  ;;  %v2163_v5 = vpop.permute.xlu0 %843 }
 0x3f6   :  { %2506 = vst [vmem:[#allocation22_spill] sm:$0xff] %v2163_v5 }
 0x3f7   :  { %1496 = vset.pattern.permute.xlu1 %v1767_v27 }
 0x3f8   :  { %743 = vperm.xlu1 %1496, %v2019_v33  }
 0x3fa   :  { %v2167_v6 = vpop.permute.xlu1 %789  ;;  %v2169_v7 = vpop.permute.xlu0 %607 }
 0x3fc   :  { %1497 = vset.pattern.permute.xlu1 %v1770_v35 }
 0x3fd   :  { %965 = vperm.xlu1 %1497, %v2009_v28  }
 0x3ff   :  { %v2173_v8 = vpop.permute.xlu1 %897  ;;  %v2175_v9 = vpop.permute.xlu0 %721 }
 0x400   :  { %2507 = vst [vmem:[#allocation23_spill] sm:$0xff] %v2173_v8 }
 0x401   :  { %1499 = vset.pattern.permute.xlu1 %v1768_v31 }
 0x402   :  { %851 = vperm.xlu1 %1499, %v2019_v33  }
 0x404   :  { %v668_v13 = vpop.permute.xlu1 %667  ;;  %v2183_v14 = vpop.permute.xlu0 %829 }
 0x405   :  { %2508 = vst [vmem:[#allocation24_spill] sm:$0xff] %v2183_v14  ;;  %v675_v15 = vmul.f32 %v2181_v11, %v668_v13  ;;  %v1538_v13 = vld [vmem:[%s2495_s10 + $0x8] sm:$0xff]  }
 0x406   :  { %1500 = vset.pattern.permute.xlu1 %v1770_v35  ;;  %v592_v35 = vsub.s32 0, %v1954_v29 }
 0x407   :  { %969 = vperm.xlu1 %1500, %v2015_v32  }
 0x408   :  { %v2223_v37 = vrot.slane %v1995_v19, %v592_v35 }
 0x409   :  { %v776_v16 = vpop.permute.xlu1 %775  ;;  %v2188_v17 = vpop.permute.xlu0 %937 }
 0x40a   :  { %2509 = vst [vmem:[#allocation25_spill] sm:$0xff] %v2188_v17  ;;  %v783_v18 = vmul.f32 %v2106_v45, %v776_v16 }
 0x40b   :  { %959 = vperm.xlu1 %1500, %v2019_v33  }
 0x40e   :  { %v884_v22 = vpop.permute.xlu1 %883  ;;  %v2198_v23 = vpop.permute.xlu0 %807 }
 0x40f   :  { %v2201_v24 = vmul.f32 %v2196_v21, %v884_v22  ;;  %1503 = vset.pattern.permute.xlu1 %v1769_v34 }
 0x410   :  { %1005 = vperm.xlu1 %1503, %v2003_v25  }
 0x413   :  { %v992_v26 = vpop.permute.xlu1 %991  ;;  %v2205_v27 = vpop.permute.xlu0 %951 }
 0x414   :  { %2510 = vst [vmem:[#allocation26_spill] sm:$0xff] %v2205_v27  ;;  %v2208_v30 = vmul.f32 %v2125_v52, %v992_v26  ;;  %1019 = vperm.xlu1 %1503, %v2009_v28   ;;  %v1537_v28 = vld [vmem:[%s2495_s10] sm:$0xff]  }
 0x415   :  { %1410 = vmatpush3.bf16.msra.mxu1 %v1537_v28 }
 0x416   :  { %1411 = vmatprep.subr.bf16.mxu1 %v2501_v12 }
 0x418   :  { %v641_v31 = vpop.permute.xlu1 %640  ;;  %v2211_v32 = vpop.permute.xlu0 %663 }
 0x419   :  { %v2215_v33 = vsel %vm166_vm0, %v2088_v40, %v641_v31  ;;  %v594_v40 = vmul.f32 %v2223_v37, %v2225_v38  ;;  %1412 = vmatpush3.bf16.msra.mxu1 %v1538_v13  ;;  %v1539_v31 = vld [vmem:[%s2495_s10 + $0x10] sm:$0xff]   ;;  %v674_v5 = vmul.f32 %v2181_v11, %v2211_v32 }
 0x41a   :  { %1413 = vmatprep.subr.bf16.mxu1 %v2501_v12 }
 0x41b   :  { %v596_v26 = vmul.f32 1.442695, %v594_v40  ;;  %v1540_v40 = vld [vmem:[%s2495_s10 + $0x18] sm:$0xff]  }
 0x41c   :  { %v2218_v34 = vpop.permute.xlu0 %677 }
 0x41d   :  { %v2220_v25 = vpop.permute.xlu1 %695  ;;  %1553 = vpow2.f32 %v596_v26  ;;  %1414 = vmatpush3.bf16.msra.mxu1 %v1539_v31  ;;  %v2277_v26 = vrot.slane %v1995_v19, %v762_v44 }
 0x41e   :  { %1415 = vmatprep.subr.bf16.mxu1 %v2501_v12  ;;  %1555 = vpow2.f32 %v658_v50 }
 0x420   :  { %v2227_v47 = vpop.permute.xlu0 %699 }
 0x421   :  { %1416 = vmatpush3.bf16.msra.mxu1 %v1540_v40  ;;  %v1542_v40 = vld [vmem:[%s2495_s10 + $0x28] sm:$0xff]  }
 0x422   :  { %v2232_v53 = vpop.permute.xlu1 %749  ;;  %1417 = vmatprep.subr.bf16.mxu1 %v2501_v12 }
 0x424   :  { %v690_v54 = vpop.permute.xlu0 %689 }
 0x425   :  { %v693_v2 = vmul.f32 %v690_v54, %v2181_v11  ;;  %v2258_v54 = vrot.slane %v1995_v19, %v708_v49 }
 0x427   :  { %v2245_v16 = vsel %vm166_vm0, %v675_v15, %v693_v2  ;;  %v2247_v22 = vpop.permute.xlu1 %803  ;;  %v710_v49 = vmul.f32 %v2258_v54, %v2225_v38  ;;  %v1554_v50 = vpop.eup %1553 }
 0x428   :  { %v1556_v8 = vpop.eup %1555 }
 0x429   :  { %v798_v28 = vpop.permute.xlu0 %797  ;;  %v712_v10 = vmul.f32 1.442695, %v710_v49  ;;  %v2299_v49 = vrot.slane %v2094_v41, %v592_v35  ;;  %v1030_v41 = vmul.f32 0.0, %v1554_v50  ;;  %v2512_v35 = vmov 0.0   ;;  %v1544_v50 = vld [vmem:[%s2495_s10 + $0x38] sm:$0xff]  }
 0x42a   :  { %v801_v15 = vmul.f32 %v798_v28, %v2106_v45  ;;  %v764_v28 = vmul.f32 %v2277_v26, %v2225_v38 }
 0x42b   :  { %1557 = vpow2.f32 %v712_v10  ;;  %v614_v58 = vmul.f32 %v2299_v49, %v2098_v43  ;;  %v2513_v10 = vsub.s32 5, %v1954_v29 }
 0x42c   :  { %v2265_v2 = vsel %vm166_vm0, %v783_v18, %v801_v15  ;;  %v2267_v13 = vpop.permute.xlu1 %857  ;;  %v1541_v18 = vld [vmem:[%s2495_s10 + $0x20] sm:$0xff]   ;;  %v2290_v15 = vrot.slane %v1995_v19, %v816_v57  ;;  %v766_v57 = vmul.f32 1.442695, %v764_v28 }
 0x42d   :  { %1418 = vmatpush3.bf16.msra.mxu1 %v1541_v18  ;;  %v2315_v43 = vrot.slane %v1995_v19, %v2513_v10 }
 0x42e   :  { %v2272_v63 = vpop.permute.xlu0 %1001  ;;  %1419 = vmatprep.subr.bf16.mxu1 %v2501_v12  ;;  %v1543_v12 = vld [vmem:[%s2495_s10 + $0x30] sm:$0xff]   ;;  %1559 = vpow2.f32 %v766_v57  ;;  %s1773_s10 = smov [#allocation14]  }
 0x42f   :  { %2511 = vst [vmem:[#allocation27_spill] sm:$0xff] %v2272_v63  ;;  %v818_v63 = vmul.f32 %v2290_v15, %v2225_v38  ;;  %s1271_s26 = sshll.u32 %s1773_s10, 4  ;;  %s1272_s26 = int_to_ptr.vmem [resolvable:$true] %s1271_s26 }
 0x430   :  { %s1721_s29 = scalar_lea.vmem %s1272_s26, 128  ;;  %p1726_p7 = scmp.lt.s32.totalorder %s1272_s26, %s1272_s26 }
 0x431   :  { %v2283_v31 = vpop.permute.xlu1 %911  ;;  %1420 = vmatpush3.bf16.msra.mxu1 %v1542_v40  ;;  %p1722_p6 = scmp.ne.s32.totalorder %s1272_s26, %s1721_s29  ;;  %p1727_p8 = scmp.lt.s32.totalorder %s1721_s29, %s1721_s29 }
 0x432   :  { %1421 = vmatprep.subr.bf16.mxu1 %v2512_v35 }
 0x433   :  { %v2292_v44 = vpop.permute.xlu0 %879  ;;  %p1728_p9 = por %p1727_p8, %p1726_p7 }
 0x435   :  { %1422 = vmatpush3.bf16.msra.mxu1 %v1543_v12  ;;  %v2514_v12 = vsub.s32 6, %v1954_v29  ;;  %p1729_p10 = pnand %p1728_p9, %p1722_p6 }
 0x436   :  { %v629_v20 = vpop.permute.xlu1 %628  ;;  %1423 = vmatprep.subr.bf16.mxu1 %v2512_v35 }
 0x437   :  { %v636_v18 = vmul.f32 %v629_v20, %v2299_v49  ;;  %v2306_v27 = vpop.permute.xlu0 %893  ;;  %v820_v20 = vmul.f32 1.442695, %v818_v63  ;;  %v872_v63 = vmul.f32 %v2315_v43, %v2225_v38  ;;  %v2335_v57 = vrot.slane %v1995_v19, %v2514_v12 }
 0x439   :  { %v648_v28 = vsel %vm166_vm0, %v614_v58, %v636_v18  ;;  %1424 = vmatpush3.bf16.msra.mxu1 %v1544_v50  ;;  %1561 = vpow2.f32 %v820_v20  ;;  %v2515_v20 = vsub.s32 7, %v1954_v29 }
 0x43a   :  { %v1032_v17 = vadd.f32 %v1030_v41, %v648_v28 }
 0x43b   :  { %v686_v36 = vpop.permute.xlu1 %685  ;;  %v2318_v40 = vpop.permute.xlu0 %915 }
 0x43c   :  { %v2326_v10 = vmul.f32 %v1032_v17, %v2215_v33  ;;  %v1044_v14 = vmul.f32 %v1556_v8, %v1032_v17  ;;  %v692_v58 = vmul.f32 %v686_v36, %v2181_v11  ;;  %v1558_v33 = vpop.eup %1557  ;;  %v704_v36 = vsel %vm166_vm0, %v2218_v34, %v2220_v25 }
 0x43d   :  { %v874_v17 = vmul.f32 1.442695, %v872_v63  ;;  %v2354_v34 = vrot.slane %v1995_v19, %v2515_v20  ;;  %v1560_v63 = vpop.eup %1559 }
 0x43e   :  { %v702_v18 = vsel %vm166_vm0, %v674_v5, %v692_v58  ;;  %v926_v5 = vmul.f32 %v2335_v57, %v2225_v38 }
 0x43f   :  { %v1046_v41 = vadd.f32 %v1044_v14, %v702_v18  ;;  %v906_v32 = vpop.permute.xlu0 %905  ;;  %1563 = vpow2.f32 %v874_v17  ;;  %v758_v18 = vsel %vm166_vm0, %v2096_v42, %v2232_v53 }
 0x440   :  { %v909_v8 = vmul.f32 %v906_v32, %v2196_v21  ;;  %v740_v11 = vpop.permute.xlu1 %739  ;;  %v928_v32 = vmul.f32 1.442695, %v926_v5 }
 0x441   :  { %v2342_v35 = vmul.f32 %v1046_v41, %v704_v36  ;;  %v746_v28 = vmul.f32 %v740_v11, %v2120_v51  ;;  %v1058_v12 = vmul.f32 %v1558_v33, %v1046_v41  ;;  %v812_v11 = vsel %vm166_vm0, %v2086_v39, %v2247_v22 }
 0x442   :  { %v2349_v14 = vsel %vm166_vm0, %v2201_v24, %v909_v8  ;;  %1565 = vpow2.f32 %v928_v32  ;;  %v890_v39 = vmul.f32 %v2196_v21, %v2292_v44  ;;  %v589_v44 = vld [vmem:[#allocation11 + $0x8] sm:$0xff] }
 0x443   :  { %v756_v25 = vsel %vm166_vm0, %v2128_v55, %v746_v28  ;;  %v980_v55 = vmul.f32 %v2354_v34, %v2225_v38  ;;  %v1562_v53 = vpop.eup %1561 }
 0x444   :  { %v1060_v50 = vadd.f32 %v1058_v12, %v756_v25  ;;  %v1014_v58 = vpop.permute.xlu0 %1013 }
 0x445   :  { %v1017_v41 = vmul.f32 %v1014_v58, %v2125_v52  ;;  %v794_v24 = vpop.permute.xlu1 %793 }
 0x446   :  { %v2362_v33 = vmul.f32 %v1060_v50, %v758_v18  ;;  %v800_v29 = vmul.f32 %v794_v24, %v2106_v45  ;;  %v1072_v19 = vmul.f32 %v1560_v63, %v1060_v50  ;;  %v982_v45 = vmul.f32 1.442695, %v980_v55 }
 0x447   :  { %v2369_v36 = vsel %vm166_vm0, %v2208_v30, %v1017_v41  ;;  %v920_v41 = vsel %vm166_vm0, %v2306_v27, %v2283_v31 }
 0x448   :  { %v810_v8 = vsel %vm166_vm0, %v2111_v48, %v800_v29  ;;  %1567 = vpow2.f32 %v982_v45  ;;  %v866_v48 = vsel %vm166_vm0, %v2108_v46, %v2267_v13  ;;  %v657_v45 = vmul.f32 %v2238_v60, %v589_v44 }
 0x449   :  { %v1074_v42 = vadd.f32 %v1072_v19, %v810_v8  ;;  %v1564_v20 = vpop.eup %1563 }
 0x44a   :  { %v848_v17 = vpop.permute.xlu1 %847 }
 0x44b   :  { %v2376_v28 = vmul.f32 %v1074_v42, %v812_v11  ;;  %v854_v38 = vmul.f32 %v848_v17, %v2139_v59  ;;  %v1086_v12 = vmul.f32 %v1562_v53, %v1074_v42  ;;  %v595_v42 = vmul.f32 %v2223_v37, %v589_v44 }
 0x44c   :  { %v765_v37 = vmul.f32 %v2277_v26, %v589_v44 }
 0x44d   :  { %v864_v30 = vsel %vm166_vm0, %v2144_v62, %v854_v38  ;;  %v1566_v62 = vpop.eup %1565  ;;  %v598_v17 = vmul.f32 1.442695, %v595_v42  ;;  %v711_v38 = vmul.f32 %v2258_v54, %v589_v44 }
 0x44e   :  { %v1088_v5 = vadd.f32 %v1086_v12, %v864_v30  ;;  %v660_v12 = vmul.f32 1.442695, %v657_v45 }
 0x44f   :  { %v902_v25 = vpop.permute.xlu1 %901  ;;  %1569 = vpow2.f32 %v598_v17  ;;  %v714_v30 = vmul.f32 1.442695, %v711_v38  ;;  %v981_v17 = vmul.f32 %v2354_v34, %v589_v44  ;;  %v813_v34 = vsel %vm166_vm0, %v2167_v6, %v2198_v23 }
 0x450   :  { %v2386_v22 = vmul.f32 %v1088_v5, %v866_v48  ;;  %v908_v50 = vmul.f32 %v902_v25, %v2196_v21  ;;  %v1100_v58 = vmul.f32 %v1564_v20, %v1088_v5  ;;  %1571 = vpow2.f32 %v660_v12 }
 0x451   :  { %1573 = vpow2.f32 %v714_v30  ;;  %v768_v20 = vmul.f32 1.442695, %v765_v37  ;;  %v615_v48 = vmul.f32 %v2299_v49, %v2169_v7  ;;  %v819_v25 = vmul.f32 %v2290_v15, %v589_v44 }
 0x452   :  { %v918_v63 = vsel %vm166_vm0, %v890_v39, %v908_v50  ;;  %v1568_v19 = vpop.eup %1567  ;;  %v873_v7 = vmul.f32 %v2315_v43, %v589_v44 }
 0x453   :  { %v1102_v18 = vadd.f32 %v1100_v58, %v918_v63  ;;  %1575 = vpow2.f32 %v768_v20 }
 0x454   :  { %v956_v24 = vpop.permute.xlu1 %955  ;;  %v876_v43 = vmul.f32 1.442695, %v873_v7  ;;  %v2517_v7 = vld [vmem:[#allocation22_spill] sm:$0xff] }
 0x455   :  { %v2393_v32 = vmul.f32 %v1102_v18, %v920_v41  ;;  %v962_v46 = vmul.f32 %v956_v24, %v2152_v1  ;;  %v1114_v13 = vmul.f32 %v1566_v62, %v1102_v18  ;;  %v822_v18 = vmul.f32 1.442695, %v819_v25  ;;  %v2516_v25 = vld [vmem:[#allocation24_spill] sm:$0xff] }
 0x457   :  { %v972_v29 = vsel %vm166_vm0, %v2157_v4, %v962_v46  ;;  %v705_v46 = vsel %vm166_vm0, %v2161_v0, %v2227_v47  ;;  %1577 = vpow2.f32 %v822_v18 }
 0x458   :  { %v2398_v21 = vadd.f32 %v1114_v13, %v972_v29  ;;  %1579 = vpow2.f32 %v876_v43 }
 0x459   :  { %v1010_v55 = vpop.permute.xlu1 %1009  ;;  %v1570_v5 = vpop.eup %1569 }
 0x45a   :  { %v1016_v8 = vmul.f32 %v1010_v55, %v2125_v52  ;;  %v1128_v27 = vmul.f32 %v1568_v19, %v2398_v21  ;;  %v1031_v39 = vmul.f32 0.0, %v1570_v5  ;;  %v1572_v58 = vpop.eup %1571  ;;  %v927_v55 = vmul.f32 %v2335_v57, %v589_v44 }
 0x45b   :  { %v1574_v24 = vpop.eup %1573 }
 0x45c   :  { %v1026_v31 = vsel %vm166_vm0, %v2131_v56, %v1016_v8  ;;  %v729_v8 = vmul.f32 %v2120_v51, %v2175_v9  ;;  %v930_v45 = vmul.f32 1.442695, %v927_v55 }
 0x45d   :  { %v2405_v53 = vadd.f32 %v1128_v27, %v1026_v31 }
 0x45e   :  { %v646_v11 = vpop.permute.xlu1 %645  ;;  %1581 = vpow2.f32 %v930_v45 }
 0x45f   :  { %v651_v26 = vsel %vm166_vm0, %v2141_v61, %v646_v11  ;;  %v1576_v11 = vpop.eup %1575 }
 0x463   :  { %v754_v4 = vpop.permute.xlu1 %753 }
 0x464   :  { %v759_v57 = vsel %vm166_vm0, %v2154_v3, %v754_v4 }
 0x468   :  { %v2409_v52 = vpop.permute.xlu1 %861 }
 0x46d   :  { %v634_v56 = vpop.permute.xlu1 %633 }
 0x46e   :  { %v637_v60 = vmul.f32 %v634_v56, %v2299_v49  ;;  %v984_v56 = vmul.f32 1.442695, %v981_v17  ;;  %v2520_v17 = vld [vmem:[#allocation25_spill] sm:$0xff] }
 0x46f   :  { %v945_v45 = vmul.f32 %v2152_v1, %v2520_v17 }
 0x470   :  { %v649_v54 = vsel %vm166_vm0, %v615_v48, %v637_v60  ;;  %v1578_v48 = vpop.eup %1577  ;;  %1583 = vpow2.f32 %v984_v56 }
 0x471   :  { %v1033_v50 = vadd.f32 %v1031_v39, %v649_v54  ;;  %v837_v39 = vmul.f32 %v2139_v59, %v2516_v25 }
 0x472   :  { %v2419_v63 = vpop.permute.xlu1 %947 }
 0x473   :  { %v1035_v62 = vmul.f32 %v1033_v50, %v651_v26  ;;  %v1045_v41 = vmul.f32 %v1572_v58, %v1033_v50 }
 0x475   :  { %v1036_v49 = vadd.f32 %v1035_v62, %v2326_v10  ;;  %v1047_v15 = vadd.f32 %v1045_v41, %v2245_v16  ;;  %v1580_v41 = vpop.eup %1579 }
 0x476   :  { %v1582_v43 = vpop.eup %1581 }
 0x477   :  { %v1037_v13 = vrot.slane %v1036_v49, 4  ;;  %v1049_v29 = vmul.f32 %v1047_v15, %v705_v46  ;;  %v1059_v61 = vmul.f32 %v1574_v24, %v1047_v15  ;;  %v744_v19 = vpop.permute.xlu1 %743 }
 0x478   :  { %v747_v10 = vmul.f32 %v744_v19, %v2120_v51 }
 0x479   :  { %v1038_v42 = vadd.f32 %v1037_v13, %v1036_v49  ;;  %v1050_v16 = vadd.f32 %v1049_v29, %v2342_v35  ;;  %v867_v49 = vsel %vm166_vm0, %v2517_v7, %v2409_v52  ;;  %v2518_v29 = vld [vmem:[#allocation20_spill] sm:$0xff] }
 0x47a   :  { %v757_v27 = vsel %vm166_vm0, %v729_v8, %v747_v10  ;;  %v2519_v10 = vld [vmem:[#allocation23_spill] sm:$0xff]  ;;  %v1584_v56 = vpop.eup %1583 }
 0x47b   :  { %v1039_v31 = vrot.slane %v1038_v42, 2  ;;  %v1051_v0 = vrot.slane %v1050_v16, 4  ;;  %v1061_v47 = vadd.f32 %v1059_v61, %v757_v27  ;;  %v1152_v61 = vsub.f32 0.0, %v2518_v29 }
 0x47c   :  { %v966_v9 = vpop.permute.xlu1 %965 }
 0x47d   :  { %v1040_v38 = vadd.f32 %v1039_v31, %v1038_v42  ;;  %v1052_v12 = vadd.f32 %v1051_v0, %v1050_v16  ;;  %v1063_v51 = vmul.f32 %v1061_v47, %v759_v57  ;;  %v1073_v30 = vmul.f32 %v1576_v11, %v1061_v47 }
 0x47e   :  { %v921_v42 = vsel %vm166_vm0, %v2519_v10, %v2318_v40  ;;  %v1153_v11 = vmul.f32 1.442695, %v1152_v61  ;;  %v2523_v10 = vld [vmem:[#allocation21_spill] sm:$0xff] }
 0x47f   :  { %v1041_v37 = vrot.slane %v1040_v38, 1  ;;  %v1053_v35 = vrot.slane %v1052_v12, 2  ;;  %v1064_v5 = vadd.f32 %v1063_v51, %v2362_v33  ;;  %v1075_v20 = vadd.f32 %v1073_v30, %v2265_v2 }
 0x480   :  { %1585 = vpow2.f32 %v1153_v11 }
 0x481   :  { %v1042_v44 = vadd.f32 %v1041_v37, %v1040_v38  ;;  %v1054_v3 = vadd.f32 %v1053_v35, %v1052_v12  ;;  %v1065_v4 = vrot.slane %v1064_v5, 4  ;;  %v852_v60 = vpop.permute.xlu1 %851  ;;  %v1077_v54 = vmul.f32 %v1075_v20, %v813_v34 }
 0x482   :  { %v1087_v50 = vmul.f32 %v1578_v48, %v1075_v20  ;;  %v855_v33 = vmul.f32 %v852_v60, %v2139_v59 }
 0x483   :  { %1043 = vst [vmem:[#allocation2] sm:$0x1] %v1042_v44  ;;  %v1055_v58 = vrot.slane %v1054_v3, 1  ;;  %v1066_v26 = vadd.f32 %v1065_v4, %v1064_v5  ;;  %v1078_v2 = vadd.f32 %v1077_v54, %v2376_v28 }
 0x484   :  { %v865_v18 = vsel %vm166_vm0, %v837_v39, %v855_v33  ;;  %v2522_v33 = vld [vmem:[#allocation27_spill] sm:$0xff] }
 0x485   :  { %v1056_v62 = vadd.f32 %v1055_v58, %v1054_v3  ;;  %v1067_v6 = vrot.slane %v1066_v26, 2  ;;  %v1089_v23 = vadd.f32 %v1087_v50, %v865_v18  ;;  %v1079_v15 = vrot.slane %v1078_v2, 4 }
 0x486   :  { %v970_v24 = vpop.permute.xlu1 %969 }
 0x487   :  { %1057 = vst [vmem:[#allocation2 + $0x1] sm:$0x1] %v1056_v62  ;;  %v1068_v59 = vadd.f32 %v1067_v6, %v1066_v26  ;;  %v1091_v46 = vmul.f32 %v1089_v23, %v867_v49  ;;  %v1101_v13 = vmul.f32 %v1580_v41, %v1089_v23  ;;  %v1080_v28 = vadd.f32 %v1079_v15, %v1078_v2 }
 0x489   :  { %v1069_v19 = vrot.slane %v1068_v59, 1  ;;  %v1092_v55 = vadd.f32 %v1091_v46, %v2386_v22  ;;  %v1103_v8 = vadd.f32 %v1101_v13, %v2349_v14  ;;  %v1081_v52 = vrot.slane %v1080_v28, 2 }
 0x48a   :  { %v960_v16 = vpop.permute.xlu1 %959  ;;  %v974_v14 = vsel %vm166_vm0, %v2419_v63, %v966_v9  ;;  %v1586_v15 = vpop.eup %1585 }
 0x48b   :  { %v1070_v27 = vadd.f32 %v1069_v19, %v1068_v59  ;;  %v1093_v31 = vrot.slane %v1092_v55, 4  ;;  %v1105_v0 = vmul.f32 %v1103_v8, %v921_v42  ;;  %v1115_v47 = vmul.f32 %v1582_v43, %v1103_v8  ;;  %v1318_v8 = vld [vmem:[#allocation12] ss:$0 sm:$0xff] }
 0x48c   :  { %v1082_v57 = vadd.f32 %v1081_v52, %v1080_v28  ;;  %v963_v22 = vmul.f32 %v960_v16, %v2152_v1  ;;  %v1118_v20 = vmul.f32 %v2398_v21, %v974_v14  ;;  %v2521_v1 = vld [vmem:[#allocation26_spill] sm:$0xff]  ;;  %v1155_v46 = vadd.f32 1.0, %v1586_v15 }
 0x48d   :  { %1071 = vst [vmem:[#allocation2 + $0x2] sm:$0x1] %v1070_v27  ;;  %v1094_v38 = vadd.f32 %v1093_v31, %v1092_v55  ;;  %v1106_v40 = vadd.f32 %v1105_v0, %v2393_v32  ;;  %v975_v34 = vsel %vm166_vm0, %v2521_v1, %v970_v24  ;;  %v1024_v32 = vpop.permute.xlu0 %1023  ;;  %v1150_v42 = vmul.f32 %v1318_v8, %v2523_v10 }
 0x48e   :  { %v1083_v12 = vrot.slane %v1082_v57, 1  ;;  %v973_v51 = vsel %vm166_vm0, %v945_v45, %v963_v22  ;;  %1587 = vrcp.f32 %v1155_v46 }
 0x48f   :  { %v1095_v30 = vrot.slane %v1094_v38, 2  ;;  %v1107_v37 = vrot.slane %v1106_v40, 4  ;;  %v1117_v35 = vadd.f32 %v1115_v47, %v973_v51  ;;  %v1006_v5 = vpop.permute.xlu1 %1005 }
 0x490   :  { %v1084_v48 = vadd.f32 %v1083_v12, %v1082_v57  ;;  %v1029_v50 = vsel %vm166_vm0, %v1006_v5, %v1024_v32 }
 0x491   :  { %v1096_v44 = vadd.f32 %v1095_v30, %v1094_v38  ;;  %v1108_v63 = vadd.f32 %v1107_v37, %v1106_v40  ;;  %v1119_v9 = vmul.f32 %v1117_v35, %v975_v34  ;;  %v1129_v3 = vmul.f32 %v1584_v56, %v1117_v35 }
 0x492   :  { %1085 = vst [vmem:[#allocation2 + $0x3] sm:$0x1] %v1084_v48 }
 0x493   :  { %v1097_v4 = vrot.slane %v1096_v44, 1  ;;  %v1109_v60 = vrot.slane %v1108_v63, 2  ;;  %v1120_v25 = vadd.f32 %v1119_v9, %v1118_v20  ;;  %v1131_v39 = vadd.f32 %v1129_v3, %v2369_v36  ;;  %v1020_v54 = vpop.permute.xlu1 %1019 }
 0x494   :  { %v1028_v21 = vsel %vm166_vm0, %v2522_v33, %v1020_v54 }
 0x495   :  { %v1098_v58 = vadd.f32 %v1097_v4, %v1096_v44  ;;  %v1110_v26 = vadd.f32 %v1109_v60, %v1108_v63  ;;  %v1121_v2 = vrot.slane %v1120_v25, 4  ;;  %v1133_v18 = vmul.f32 %v1131_v39, %v1029_v50 }
 0x496   :  { %v1132_v62 = vmul.f32 %v2405_v53, %v1028_v21 }
 0x497   :  { %1099 = vst [vmem:[#allocation2 + $0x4] sm:$0x1] %v1098_v58  ;;  %v1111_v6 = vrot.slane %v1110_v26, 1  ;;  %v1122_v23 = vadd.f32 %v1121_v2, %v1120_v25 }
 0x498   :  { %v1134_v41 = vadd.f32 %v1133_v18, %v1132_v62  ;;  %v1588_v43 = vpop.eup %1587 }
 0x499   :  { %v1112_v7 = vadd.f32 %v1111_v6, %v1110_v26  ;;  %v1123_v49 = vrot.slane %v1122_v23, 2  ;;  %v1157_v16 = vmul.f32 %v1588_v43, %v2518_v29 }
 0x49a   :  { %v1135_v36 = vrot.slane %v1134_v41, 4 }
 0x49b   :  { %1113 = vst [vmem:[#allocation2 + $0x5] sm:$0x1] %v1112_v7  ;;  %v1124_v24 = vadd.f32 %v1123_v49, %v1122_v23 }
 0x49c   :  { %v1136_v59 = vadd.f32 %v1135_v36, %v1134_v41 }
 0x49d   :  { %v1125_v13 = vrot.slane %v1124_v24, 1 }
 0x49e   :  { %v1137_v61 = vrot.slane %v1136_v59, 2 }
 0x49f   :  { %v1126_v28 = vadd.f32 %v1125_v13, %v1124_v24 }
 0x4a0   :  { %v1138_v19 = vadd.f32 %v1137_v61, %v1136_v59 }
 0x4a1   :  { %1127 = vst [vmem:[#allocation2 + $0x6] sm:$0x1] %v1126_v28 }
 0x4a2   :  { %v1139_v55 = vrot.slane %v1138_v19, 1 }
 0x4a4   :  { %v1140_v53 = vadd.f32 %v1139_v55, %v1138_v19 }
 0x4a6   :  { %1141 = vst [vmem:[#allocation2 + $0x7] sm:$0x1] %v1140_v53 }
 0x4ad   :  { %v1142_v52 = vld [vmem:[#allocation2] sm:$0xff] }
 0x4ae   :  { %v1151_v27 = vadd.f32 %v1150_v42, %v1142_v52 }
 0x4b0   :  { %v1158_v31 = vmul.f32 %v1157_v16, %v1151_v27 }
 0x4b2   :  { %v1159_v0 = vpack.c.bf16 %v1158_v31, %v1158_v31 }
 0x4b4   :  { %1426 = vmatmul.mubr.bf16.vlgmr.msra.gmra.mrb[4].mxu1 %v1159_v0 }
 0x587   :  { %v1258_v47 = vpop.f32.mrb[4].mxu1 }
 0x588   :  { %1264 = vst.msk [vmem:[#allocation14] sm:$0xff] %vm166_vm0, %v1258_v47  ;;  %v1427_v11 = vpop.f32.mrb[5].mxu1 }
 0x589   :  { %v1261_v17 = vpop.f32.mrb[6].mxu1 }
 0x58a   :  { %1732 = shalt.err (!%p1729_p10)
}
 0x58b   :  { %s1733_s30 = scalar_lea.hbm %s2496_s11, 128 }
 0x58c   :  { %p1734_p11 = scmp.ne.s32.totalorder %s2496_s11, %s1733_s30  ;;  %p1737_p12 = scmp.lt.u32.totalorder %s1733_s30, %s2496_s11 }
 0x58e   :  { %p1739_p13 = pnand %p1737_p12, %p1734_p11 }
 0x590   :  { %1742 = shalt.err (!%p1739_p13)
}
 0x591   :  { %1274 = dma.vmem_to_hbm [thread:$0]  %s1272_s26, 128, %s2496_s11, [#allocation5]   ;;  %v1428_v29 = vpop.f32.mrb[7].mxu1 }
 0x592   :  { %1751 = dma.done.wait [#allocation5], 128  }
 0x593   :  { %1752 = vsyncadd [#allocation5], 4294967168 }
 0x594   :  { %1278 = vsyncpa [#allocation4], 1 }
 0x595   :  { %1279 = vsyncpa [#allocation7], 1 }
 0x596   :  { %1280 = vsyncpa [#allocation10], 1 }
 0x597   :  { %1281 = vsyncpa [#allocation13], 1 }
 0x598   :  { %1282 = vsyncpa [#allocation5], 1 }

</bundles_post_ra>
